<compile_context>
chip_gen: v7x
topology: tpu7x:2x2x1
jax: 0.10.0
libtpu: 0.0.40
codegen_flags: <defaults>
</compile_context>

<pallas_src>
import functools
import math

import jax
import jax.numpy as jnp
from jax.experimental import pallas as pl
from jax.experimental.pallas import tpu as pltpu


def _round_up(x, m):
    return (x + m - 1) // m * m


def _pad2(a, rows, cols):
    """Pad a 2-D array only if needed (avoids no-op HBM copies)."""
    r, c = a.shape
    if r == rows and c == cols:
        return a
    return jnp.pad(a, ((0, rows - r), (0, cols - c)))


# Tile caps: double-buffered bf16 input tiles + f32 accumulator fit comfortably
# inside v7x's 64 MiB VMEM (and trivially inside v5e/v6e 128 MiB).
_TM, _TN, _TK = 256, 256, 1024


# ----------------------------------------------------------------------------
# Fused [LayerNorm] -> matmul -> bias [-> GELU] [-> +residual] kernel
# ----------------------------------------------------------------------------
def _fused_linear_kernel(*refs, activation, has_ln, has_res, nk, eps):
    x_ref, w_ref, b_ref = refs[0], refs[1], refs[2]
    idx = 3
    if has_ln:
        g_ref, beta_ref = refs[3], refs[4]
        idx = 5
    if has_res:
        r_ref = refs[idx]
        idx += 1
    o_ref, acc_ref = refs[idx], refs[idx + 1]

    k = pl.program_id(2)

    @pl.when(k == 0)
    def _():
        acc_ref[...] = jnp.zeros_like(acc_ref)

    xv = x_ref[...]
    if has_ln:  # LayerNorm prologue (x block carries the full feature row).
        mean = jnp.mean(xv, axis=-1, keepdims=True)
        xc = xv - mean
        var = jnp.mean(xc * xc, axis=-1, keepdims=True)
        xv = (xc * jax.lax.rsqrt(var + eps)) * g_ref[...] + beta_ref[...]
    xv = xv.astype(jnp.bfloat16)  # bf16 on the MXU, f32 accumulation.
    acc_ref[...] += jnp.dot(xv, w_ref[...], preferred_element_type=jnp.float32)

    @pl.when(k == nk - 1)
    def _():
        y = acc_ref[...] + b_ref[...]
        if activation == "gelu":
            # tanh-approx GELU (EUP lowering); reference path matches.
            y = jax.nn.gelu(y, approximate=True)
        if has_res:
            y = y + r_ref[...]
        o_ref[...] = y.astype(o_ref.dtype)


def fused_linear_pallas(x, w, b, *, activation=None, residual=None, ln=None,
                        eps=1e-6):
    """y = [LN](x) @ w + b [gelu] [+ residual];  x:[M,K], w:[K,N], b:[N]."""
    M, K = x.shape
    N = w.shape[1]
    has_ln = ln is not None
    has_res = residual is not None

    tm = min(_TM, _round_up(M, 8))
    tn = min(_TN, _round_up(N, 128))
    Mp = _round_up(M, tm)
    Np = _round_up(N, tn)
    if has_ln:
        # LN statistics need the whole feature row -> keep K un-tiled/un-padded
        # (a block dim equal to the full array dim is always legal).
        tk, Kp = K, K
    else:
        tk = min(_TK, _round_up(K, 128))
        Kp = _round_up(K, tk)
    nk = Kp // tk

    if has_ln:
        xp = _pad2(x, Mp, K)  # stays f32 for the LN prologue
    else:
        # cast activations to bf16 in the wrapper -> halves the x DMA traffic
        xp = _pad2(x.astype(jnp.bfloat16), Mp, Kp)
    wp = _pad2(w.astype(jnp.bfloat16), Kp, Np)
    bp = _pad2(b.reshape(1, N), 1, Np)

    inputs = [xp, wp, bp]
    in_specs = [
        pl.BlockSpec((tm, tk), lambda i, j, k: (i, k)),
        pl.BlockSpec((tk, tn), lambda i, j, k: (k, j)),
        pl.BlockSpec((1, tn), lambda i, j, k: (0, j)),
    ]
    if has_ln:
        g, beta = ln
        inputs += [g.reshape(1, K), beta.reshape(1, K)]
        in_specs += [pl.BlockSpec((1, K), lambda i, j, k: (0, 0)),
                     pl.BlockSpec((1, K), lambda i, j, k: (0, 0))]
    if has_res:
        inputs.append(_pad2(residual, Mp, Np))
        in_specs.append(pl.BlockSpec((tm, tn), lambda i, j, k: (i, j)))

    bytes_accessed = sum(int(a.size) * a.dtype.itemsize for a in inputs) + Mp * Np * 4
    cost = pl.CostEstimate(flops=2 * Mp * Np * Kp,
                           transcendentals=(Mp * Np if activation == "gelu" else 0),
                           bytes_accessed=bytes_accessed)

    out = pl.pallas_call(
        functools.partial(_fused_linear_kernel, activation=activation,
                          has_ln=has_ln, has_res=has_res, nk=nk, eps=eps),
        out_shape=jax.ShapeDtypeStruct((Mp, Np), jnp.float32),
        grid=(Mp // tm, Np // tn, nk),
        in_specs=in_specs,
        out_specs=pl.BlockSpec((tm, tn), lambda i, j, k: (i, j)),
        scratch_shapes=[pltpu.VMEM((tm, tn), jnp.float32)],
        compiler_params=pltpu.CompilerParams(
            dimension_semantics=("parallel", "parallel", "arbitrary")),
        cost_estimate=cost,
    )(*inputs)
    if Mp == M and Np == N:
        return out
    return out[:M, :N]


# ----------------------------------------------------------------------------
# Standalone row-tiled LayerNorm (used only for the final LN)
# ----------------------------------------------------------------------------
def _layernorm_kernel(x_ref, g_ref, b_ref, o_ref, *, eps):
    x = x_ref[...]
    mean = jnp.mean(x, axis=-1, keepdims=True)
    xc = x - mean
    var = jnp.mean(xc * xc, axis=-1, keepdims=True)
    o_ref[...] = (xc * jax.lax.rsqrt(var + eps)) * g_ref[...] + b_ref[...]


def layernorm_pallas(x, g, b, eps=1e-6):
    M, D = x.shape
    tm = min(512, _round_up(M, 8))
    Mp = _round_up(M, tm)
    xp = _pad2(x, Mp, D)
    out = pl.pallas_call(
        functools.partial(_layernorm_kernel, eps=eps),
        out_shape=jax.ShapeDtypeStruct((Mp, D), jnp.float32),
        grid=(Mp // tm,),
        in_specs=[pl.BlockSpec((tm, D), lambda i: (i, 0)),
                  pl.BlockSpec((1, D), lambda i: (0, 0)),
                  pl.BlockSpec((1, D), lambda i: (0, 0))],
        out_specs=pl.BlockSpec((tm, D), lambda i: (i, 0)),
        compiler_params=pltpu.CompilerParams(dimension_semantics=("parallel",)),
    )(xp, g.reshape(1, D), b.reshape(1, D))
    return out if Mp == M else out[:M]


# ----------------------------------------------------------------------------
# Attention: all heads of one batch row per grid step, lane-dense [S, D] output
# ----------------------------------------------------------------------------
def _attn_kernel(qkv_ref, o_ref, *, num_heads, head_dim, scale):
    qkv = qkv_ref[0]                              # [S, 3*D]
    D = num_heads * head_dim
    outs = []
    for h in range(num_heads):                    # static unroll over heads
        lo = h * head_dim
        q = (qkv[:, lo:lo + head_dim] * scale).astype(jnp.bfloat16)  # pre-scaled
        k = qkv[:, D + lo:D + lo + head_dim].astype(jnp.bfloat16)
        v = qkv[:, 2 * D + lo:2 * D + lo + head_dim].astype(jnp.bfloat16)
        s = jax.lax.dot_general(q, k, (((1,), (1,)), ((), ())),
                                preferred_element_type=jnp.float32)
        m = jnp.max(s, axis=-1, keepdims=True)
        p = jnp.exp(s - m)
        p = p * pl.reciprocal(jnp.sum(p, axis=-1, keepdims=True), approx=True)
        outs.append(jnp.dot(p.astype(jnp.bfloat16), v,
                            preferred_element_type=jnp.float32))
    # One lane-dense [S, D] store instead of H masked per-head stores.
    o_ref[0] = jnp.concatenate(outs, axis=-1).astype(o_ref.dtype)


def attention_pallas(qkv, num_heads):
    """qkv: [B, S, 3*D] -> [B, S, D] (heads handled inside the kernel)."""
    # TODO(synk): for long sequences, tile S with an online-softmax (flash) loop.
    B, S, threeD = qkv.shape
    D = threeD // 3
    hd = D // num_heads
    scale = 1.0 / math.sqrt(hd)
    cost = pl.CostEstimate(flops=4 * B * num_heads * S * S * hd,
                           transcendentals=B * num_heads * S * S,
                           bytes_accessed=(int(qkv.size) + B * S * D) * 4)
    return pl.pallas_call(
        functools.partial(_attn_kernel, num_heads=num_heads, head_dim=hd,
                          scale=scale),
        out_shape=jax.ShapeDtypeStruct((B, S, D), jnp.float32),
        grid=(B,),
        in_specs=[pl.BlockSpec((1, S, threeD), lambda i: (i, 0, 0))],
        out_specs=pl.BlockSpec((1, S, D), lambda i: (i, 0, 0)),
        compiler_params=pltpu.CompilerParams(dimension_semantics=("parallel",)),
        cost_estimate=cost,
    )(qkv)


# ----------------------------------------------------------------------------
# Bilinear interpolation (F.interpolate mode='bilinear', align_corners=False)
# applied directly on tokens, keeping D on the lane axis.
# ----------------------------------------------------------------------------
def bilinear_weights(out_size, in_size):
    scale = in_size / out_size
    dst = jnp.arange(out_size, dtype=jnp.float32)
    src = jnp.maximum((dst + 0.5) * scale - 0.5, 0.0)
    i0 = jnp.clip(jnp.floor(src).astype(jnp.int32), 0, in_size - 1)
    i1 = jnp.clip(i0 + 1, 0, in_size - 1)
    frac = src - i0.astype(jnp.float32)
    rows = jnp.arange(out_size)
    w = jnp.zeros((out_size, in_size), jnp.float32)
    w = w.at[rows, i0].add(1.0 - frac)
    w = w.at[rows, i1].add(frac)
    return w


def _resize_kernel(m_ref, f_ref, o_ref):
    o_ref[0] = jnp.dot(m_ref[...], f_ref[0],
                       preferred_element_type=jnp.float32).astype(o_ref.dtype)


def resize_tokens_pallas(feats, R, ho, wo):
    """[B, R*R, D] -> [B, ho*wo, D]: out_b = M @ feats_b, M exact separable
    bilinear weights (kron of 1-D weights).  No transposes needed."""
    B, N, D = feats.shape
    wh = bilinear_weights(ho, R)
    ww = bilinear_weights(wo, R)
    M = jnp.einsum("ir,jc->ijrc", wh, ww).reshape(ho * wo, R * R)
    return pl.pallas_call(
        _resize_kernel,
        out_shape=jax.ShapeDtypeStruct((B, ho * wo, D), jnp.float32),
        grid=(B,),
        in_specs=[pl.BlockSpec((ho * wo, R * R), lambda i: (0, 0)),
                  pl.BlockSpec((1, N, D), lambda i: (i, 0, 0))],
        out_specs=pl.BlockSpec((1, ho * wo, D), lambda i: (i, 0, 0)),
        compiler_params=pltpu.CompilerParams(dimension_semantics=("parallel",)),
    )(M, feats)


# ----------------------------------------------------------------------------
# Pure-JAX references (same bf16-operand / f32-accumulate matmul semantics)
# ----------------------------------------------------------------------------
def layernorm_ref(x, g, b, eps=1e-6):
    mean = jnp.mean(x, -1, keepdims=True)
    var = jnp.mean((x - mean) ** 2, -1, keepdims=True)
    return (x - mean) * jax.lax.rsqrt(var + eps) * g + b


def fused_linear_ref(x, w, b, *, activation=None, residual=None, ln=None,
                     eps=1e-6):
    if ln is not None:
        x = layernorm_ref(x, ln[0], ln[1], eps)
    y = jnp.dot(x.astype(jnp.bfloat16), w.astype(jnp.bfloat16),
                preferred_element_type=jnp.float32) + b
    if activation == "gelu":
        y = jax.nn.gelu(y, approximate=True)
    if residual is not None:
        y = y + residual
    return y


def attention_ref(qkv, num_heads):
    B, S, threeD = qkv.shape
    D = threeD // 3
    hd = D // num_heads

    def split_heads(t):
        return t.reshape(B, S, num_heads, hd).transpose(0, 2, 1, 3)

    q = split_heads(qkv[..., :D])
    k = split_heads(qkv[..., D:2 * D])
    v = split_heads(qkv[..., 2 * D:])
    s = jnp.einsum("bhqd,bhkd->bhqk", q, k) / math.sqrt(hd)
    p = jax.nn.softmax(s, axis=-1)
    o = jnp.einsum("bhqk,bhkd->bhqd", p, v)
    return o.transpose(0, 2, 1, 3).reshape(B, S, D)


def resize_tokens_ref(feats, R, ho, wo):
    B, N, D = feats.shape
    wh = bilinear_weights(ho, R)
    ww = bilinear_weights(wo, R)
    f = feats.reshape(B, R, R, D)
    return jnp.einsum("ir,jc,brcd->bijd", wh, ww, f).reshape(B, ho * wo, D)


# ----------------------------------------------------------------------------
# Synthetic minimal ViT (deterministic init) + FeatureExtractor forward
# ----------------------------------------------------------------------------
def init_params(key, *, C, P, D, mlp_ratio, num_patches, num_prefix):
    ks = jax.random.split(key, 8)
    s = 0.02
    hidden = int(D * mlp_ratio)
    f32 = jnp.float32
    return {
        "patch_w": s * jax.random.normal(ks[0], (C * P * P, D), f32),
        "patch_b": jnp.zeros((D,), f32),
        "prefix": s * jax.random.normal(ks[1], (num_prefix, D), f32),
        "pos": s * jax.random.normal(ks[2], (1, num_prefix + num_patches, D), f32),
        "ln1_g": jnp.ones((D,), f32), "ln1_b": jnp.zeros((D,), f32),
        "qkv_w": s * jax.random.normal(ks[3], (D, 3 * D), f32),
        "qkv_b": jnp.zeros((3 * D,), f32),
        "proj_w": s * jax.random.normal(ks[4], (D, D), f32),
        "proj_b": jnp.zeros((D,), f32),
        "ln2_g": jnp.ones((D,), f32), "ln2_b": jnp.zeros((D,), f32),
        "fc1_w": s * jax.random.normal(ks[5], (D, hidden), f32),
        "fc1_b": jnp.zeros((hidden,), f32),
        "fc2_w": s * jax.random.normal(ks[6], (hidden, D), f32),
        "fc2_b": jnp.zeros((D,), f32),
        "lnf_g": jnp.ones((D,), f32), "lnf_b": jnp.zeros((D,), f32),
    }


def vit_forward_features(params, x, ops, *, patch_size, num_heads, num_prefix):
    B, C, H, W = x.shape
    P = patch_size
    R = H // P
    N = R * R
    D = params["patch_b"].shape[0]

    # --- patch embedding (Conv2d k=s=P == unfold + matmul) ---
    # TODO(synk): fold the NCHW->[B*N, C*P*P] unfold into the patch-embed kernel
    # via a strided-DMA / Element index_map instead of this XLA transpose.
    patches = (x.reshape(B, C, R, P, R, P)
                 .transpose(0, 2, 4, 1, 3, 5)
                 .reshape(B * N, C * P * P))
    tok = ops["linear"](patches, params["patch_w"], params["patch_b"]).reshape(B, N, D)

    prefix = jnp.broadcast_to(params["prefix"][None], (B, num_prefix, D))
    z = jnp.concatenate([prefix, tok], axis=1) + params["pos"]
    S = num_prefix + N
    zf = z.reshape(B * S, D)

    # --- attention half-block: LN1 fused into QKV prologue, residual fused
    #     into the proj epilogue; no XLA head transpose between kernels. ---
    qkv = ops["linear"](zf, params["qkv_w"], params["qkv_b"],
                        ln=(params["ln1_g"], params["ln1_b"]))
    attn = ops["attention"](qkv.reshape(B, S, 3 * D), num_heads)
    zf = ops["linear"](attn.reshape(B * S, D), params["proj_w"], params["proj_b"],
                       residual=zf)

    # --- MLP half-block: LN2 + GELU fused into fc1, residual fused into fc2 ---
    h = ops["linear"](zf, params["fc1_w"], params["fc1_b"],
                      ln=(params["ln2_g"], params["ln2_b"]), activation="gelu")
    zf = ops["linear"](h, params["fc2_w"], params["fc2_b"], residual=zf)

    zf = ops["layernorm"](zf, params["lnf_g"], params["lnf_b"])
    return zf.reshape(B, S, D)


def feature_extractor_forward(params, x, ops, *, input_size, patch_size, num_heads):
    R = input_size // patch_size
    assert R * patch_size == input_size
    num_prefix = 5 if patch_size == 14 else 1
    feats = vit_forward_features(params, x, ops, patch_size=patch_size,
                                 num_heads=num_heads, num_prefix=num_prefix)
    if patch_size == 14:
        feats = feats[:, 5:]                          # drop cls + 4 registers
        feats = ops["resize"](feats, R, 14, 14)       # bilinear -> [B, 196, D]
    else:
        feats = feats[:, 1:]                          # drop cls token
    return feats


# ----------------------------------------------------------------------------
if __name__ == "__main__":
    # small shapes consistent with the patch_size==14 branch
    B, C = 2, 3
    input_size, patch_size = 28, 14       # spatial_resolution = 2
    D, num_heads, mlp_ratio = 32, 4, 4.0
    R = input_size // patch_size
    num_patches = R * R
    num_prefix = 5 if patch_size == 14 else 1

    root = jax.random.PRNGKey(0)
    pkey, xkey = jax.random.split(root)
    params = init_params(pkey, C=C, P=patch_size, D=D, mlp_ratio=mlp_ratio,
                         num_patches=num_patches, num_prefix=num_prefix)
    x = jax.random.normal(xkey, (B, C, input_size, input_size), jnp.float32)

    pallas_ops = dict(linear=fused_linear_pallas, layernorm=layernorm_pallas,
                      attention=attention_pallas, resize=resize_tokens_pallas)
    ref_ops = dict(linear=fused_linear_ref, layernorm=layernorm_ref,
                   attention=attention_ref, resize=resize_tokens_ref)

    fwd = functools.partial(feature_extractor_forward, input_size=input_size,
                            patch_size=patch_size, num_heads=num_heads)

    out = jax.jit(lambda p, xx: fwd(p, xx, pallas_ops))(params, x)
    out = jax.block_until_ready(out)
    assert out.shape == (B, 14 * 14, D), out.shape

    ref = fwd(params, x, ref_ops)
    err = float(jnp.max(jnp.abs(out - ref)))
    assert jnp.allclose(out, ref, rtol=5e-3, atol=5e-3), err

    print("KERNEL_OK")
</pallas_src>

<mosaic_0001>
module attributes {stable_mosaic.version = 11 : i64} {
  func.func @_fused_linear_kernel(%arg0: i32, %arg1: i32, %arg2: i32, %arg3: memref<8x640xbf16, #tpu.memory_space<vmem>>, %arg4: memref<640x128xbf16, #tpu.memory_space<vmem>>, %arg5: memref<1x128xf32, #tpu.memory_space<vmem>>, %arg6: memref<8x128xf32, #tpu.memory_space<vmem>>, %arg7: memref<8x128xf32, #tpu.memory_space<vmem>>) attributes {dimension_semantics = [#tpu.dimension_semantics<parallel>, #tpu.dimension_semantics<parallel>, #tpu.dimension_semantics<arbitrary>], iteration_bounds = array<i64: 1, 1, 1>, scalar_prefetch = 0 : i64, scratch_operands = 1 : i64, tpu.core_type = #tpu.core_type<tc>, window_params = [{transform_indices = @transform_0, window_bounds = array<i64: 8, 640>}, {transform_indices = @transform_1, window_bounds = array<i64: 640, 128>}, {transform_indices = @transform_2, window_bounds = array<i64: 1, 128>}, {transform_indices = @transform_3, window_bounds = array<i64: 8, 128>}]} {
    %c0_i32 = arith.constant 0 : i32
    %0 = arith.cmpi eq, %arg2, %c0_i32 : i32
    %1 = arith.extui %0 : i1 to i32
    %c0_i32_0 = arith.constant 0 : i32
    %2 = arith.cmpi ne, %1, %c0_i32_0 : i32
    scf.if %2 {
      %cst_10 = arith.constant 0.000000e+00 : f32
      %12 = vector.broadcast %cst_10 : f32 to vector<8x128xf32>
      %c0_11 = arith.constant 0 : index
      %c0_12 = arith.constant 0 : index
      %13 = vector.load %arg7[%c0_11, %c0_12] : memref<8x128xf32, #tpu.memory_space<vmem>>, vector<8x128xf32>
      tpu.vector_store %arg7[%c0_11, %c0_12], %12 {strides = array<i32>} : memref<8x128xf32, #tpu.memory_space<vmem>>, vector<8x128xf32>,
    } else {
    }
    %c0 = arith.constant 0 : index
    %c0_1 = arith.constant 0 : index
    %3 = vector.load %arg3[%c0, %c0_1] : memref<8x640xbf16, #tpu.memory_space<vmem>>, vector<8x640xbf16>
    %c0_2 = arith.constant 0 : index
    %c0_3 = arith.constant 0 : index
    %4 = vector.load %arg7[%c0_2, %c0_3] : memref<8x128xf32, #tpu.memory_space<vmem>>, vector<8x128xf32>
    %c0_4 = arith.constant 0 : index
    %c0_5 = arith.constant 0 : index
    %5 = vector.load %arg4[%c0_4, %c0_5] : memref<640x128xbf16, #tpu.memory_space<vmem>>, vector<640x128xbf16>
    %cst = arith.constant dense<0.000000e+00> : vector<8x128xf32>
    %6 = tpu.matmul %3, %5, %cst {dimension_numbers = #tpu.dot_dimension_numbers<[1], [0], [0], [1], [0, 0, 1, 1], [], []>} : vector<8x640xbf16>, vector<640x128xbf16>, vector<8x128xf32> -> vector<8x128xf32>
    %7 = arith.addf %4, %6 : vector<8x128xf32>
    %c0_6 = arith.constant 0 : index
    %c0_7 = arith.constant 0 : index
    %8 = vector.load %arg7[%c0_6, %c0_7] : memref<8x128xf32, #tpu.memory_space<vmem>>, vector<8x128xf32>
    tpu.vector_store %arg7[%c0_6, %c0_7], %7 {strides = array<i32>} : memref<8x128xf32, #tpu.memory_space<vmem>>, vector<8x128xf32>,
    %c0_i32_8 = arith.constant 0 : i32
    %9 = arith.cmpi eq, %arg2, %c0_i32_8 : i32
    %10 = arith.extui %9 : i1 to i32
    %c0_i32_9 = arith.constant 0 : i32
    %11 = arith.cmpi ne, %10, %c0_i32_9 : i32
    scf.if %11 {
      %c0_10 = arith.constant 0 : index
      %c0_11 = arith.constant 0 : index
      %12 = vector.load %arg7[%c0_10, %c0_11] : memref<8x128xf32, #tpu.memory_space<vmem>>, vector<8x128xf32>
      %c0_12 = arith.constant 0 : index
      %c0_13 = arith.constant 0 : index
      %13 = vector.load %arg5[%c0_12, %c0_13] : memref<1x128xf32, #tpu.memory_space<vmem>>, vector<1x128xf32>
      %14 = vector.broadcast %13 : vector<1x128xf32> to vector<8x128xf32>
      %15 = arith.addf %12, %14 : vector<8x128xf32>
      %c0_14 = arith.constant 0 : index
      %c0_15 = arith.constant 0 : index
      %16 = vector.load %arg6[%c0_14, %c0_15] : memref<8x128xf32, #tpu.memory_space<vmem>>, vector<8x128xf32>
      tpu.vector_store %arg6[%c0_14, %c0_15], %15 {strides = array<i32>} : memref<8x128xf32, #tpu.memory_space<vmem>>, vector<8x128xf32>,
    } else {
    }
    return
  }
  func.func @transform_0(%arg0: i32, %arg1: i32, %arg2: i32) -> (i32, i32) {
    %c0_i32 = arith.constant 0 : i32
    return %arg0, %arg2 : i32, i32
  }
  func.func @transform_1(%arg0: i32, %arg1: i32, %arg2: i32) -> (i32, i32) {
    %c0_i32 = arith.constant 0 : i32
    return %arg2, %arg1 : i32, i32
  }
  func.func @transform_2(%arg0: i32, %arg1: i32, %arg2: i32) -> (i32, i32) {
    %c0_i32 = arith.constant 0 : i32
    %c0_i32_0 = arith.constant 0 : i32
    return %c0_i32, %arg1 : i32, i32
  }
  func.func @transform_3(%arg0: i32, %arg1: i32, %arg2: i32) -> (i32, i32) {
    %c0_i32 = arith.constant 0 : i32
    return %arg0, %arg1 : i32, i32
  }
}

module attributes {stable_mosaic.version = 11 : i64} {
  func.func @_attn_kernel(%arg0: i32, %arg1: memref<1x9x96xf32, #tpu.memory_space<vmem>>, %arg2: memref<1x9x32xf32, #tpu.memory_space<vmem>>) attributes {dimension_semantics = [#tpu.dimension_semantics<parallel>], iteration_bounds = array<i64: 2>, scalar_prefetch = 0 : i64, scratch_operands = 0 : i64, tpu.core_type = #tpu.core_type<tc>, window_params = [{transform_indices = @transform_0, window_bounds = array<i64: 1, 9, 96>}, {transform_indices = @transform_1, window_bounds = array<i64: 1, 9, 32>}]} {
    %c0 = arith.constant 0 : index
    %c0_0 = arith.constant 0 : index
    %c0_1 = arith.constant 0 : index
    %0 = vector.load %arg1[%c0, %c0_0, %c0_1] : memref<1x9x96xf32, #tpu.memory_space<vmem>>, vector<1x9x96xf32>
    %1 = vector.shape_cast %0 : vector<1x9x96xf32> to vector<9x96xf32>
    %2 = vector.extract_strided_slice %1 {offsets = [0, 0], sizes = [9, 8], strides = [1, 1]} : vector<9x96xf32> to vector<9x8xf32>
    %cst = arith.constant 0.353553385 : f32
    %3 = vector.broadcast %cst : f32 to vector<9x8xf32>
    %4 = arith.mulf %2, %3 : vector<9x8xf32>
    %5 = arith.truncf %4 : vector<9x8xf32> to vector<9x8xbf16>
    %6 = vector.extract_strided_slice %1 {offsets = [0, 32], sizes = [9, 8], strides = [1, 1]} : vector<9x96xf32> to vector<9x8xf32>
    %7 = arith.truncf %6 : vector<9x8xf32> to vector<9x8xbf16>
    %8 = vector.extract_strided_slice %1 {offsets = [0, 64], sizes = [9, 8], strides = [1, 1]} : vector<9x96xf32> to vector<9x8xf32>
    %9 = arith.truncf %8 : vector<9x8xf32> to vector<9x8xbf16>
    %cst_2 = arith.constant dense<0.000000e+00> : vector<9x9xf32>
    %10 = tpu.matmul %5, %7, %cst_2 {dimension_numbers = #tpu.dot_dimension_numbers<[1], [1], [0], [0], [0, 0, 1, 0], [], []>} : vector<9x8xbf16>, vector<9x8xbf16>, vector<9x9xf32> -> vector<9x9xf32>
    %cst_3 = arith.constant dense<0xFF800000> : vector<9xf32>
    %11 = vector.multi_reduction <maximumf>, %10, %cst_3 [1] : vector<9x9xf32> to vector<9xf32>
    %12 = vector.shape_cast %11 : vector<9xf32> to vector<9x1xf32>
    %13 = vector.broadcast %12 : vector<9x1xf32> to vector<9x9xf32>
    %14 = arith.subf %10, %13 : vector<9x9xf32>
    %15 = math.exp %14 : vector<9x9xf32>
    %cst_4 = arith.constant dense<0.000000e+00> : vector<9xf32>
    %16 = vector.multi_reduction <add>, %15, %cst_4 [1] : vector<9x9xf32> to vector<9xf32>
    %17 = vector.shape_cast %16 : vector<9xf32> to vector<9x1xf32>
    %18 = tpu.reciprocal %17 {approx = true} : vector<9x1xf32> -> vector<9x1xf32>
    %19 = vector.broadcast %18 : vector<9x1xf32> to vector<9x9xf32>
    %20 = arith.mulf %15, %19 : vector<9x9xf32>
    %21 = arith.truncf %20 : vector<9x9xf32> to vector<9x9xbf16>
    %cst_5 = arith.constant dense<0.000000e+00> : vector<9x8xf32>
    %22 = tpu.matmul %21, %9, %cst_5 {dimension_numbers = #tpu.dot_dimension_numbers<[1], [0], [0], [1], [0, 0, 1, 1], [], []>} : vector<9x9xbf16>, vector<9x8xbf16>, vector<9x8xf32> -> vector<9x8xf32>
    %23 = vector.extract_strided_slice %1 {offsets = [0, 8], sizes = [9, 8], strides = [1, 1]} : vector<9x96xf32> to vector<9x8xf32>
    %cst_6 = arith.constant 0.353553385 : f32
    %24 = vector.broadcast %cst_6 : f32 to vector<9x8xf32>
    %25 = arith.mulf %23, %24 : vector<9x8xf32>
    %26 = arith.truncf %25 : vector<9x8xf32> to vector<9x8xbf16>
    %27 = vector.extract_strided_slice %1 {offsets = [0, 40], sizes = [9, 8], strides = [1, 1]} : vector<9x96xf32> to vector<9x8xf32>
    %28 = arith.truncf %27 : vector<9x8xf32> to vector<9x8xbf16>
    %29 = vector.extract_strided_slice %1 {offsets = [0, 72], sizes = [9, 8], strides = [1, 1]} : vector<9x96xf32> to vector<9x8xf32>
    %30 = arith.truncf %29 : vector<9x8xf32> to vector<9x8xbf16>
    %cst_7 = arith.constant dense<0.000000e+00> : vector<9x9xf32>
    %31 = tpu.matmul %26, %28, %cst_7 {dimension_numbers = #tpu.dot_dimension_numbers<[1], [1], [0], [0], [0, 0, 1, 0], [], []>} : vector<9x8xbf16>, vector<9x8xbf16>, vector<9x9xf32> -> vector<9x9xf32>
    %cst_8 = arith.constant dense<0xFF800000> : vector<9xf32>
    %32 = vector.multi_reduction <maximumf>, %31, %cst_8 [1] : vector<9x9xf32> to vector<9xf32>
    %33 = vector.shape_cast %32 : vector<9xf32> to vector<9x1xf32>
    %34 = vector.broadcast %33 : vector<9x1xf32> to vector<9x9xf32>
    %35 = arith.subf %31, %34 : vector<9x9xf32>
    %36 = math.exp %35 : vector<9x9xf32>
    %cst_9 = arith.constant dense<0.000000e+00> : vector<9xf32>
    %37 = vector.multi_reduction <add>, %36, %cst_9 [1] : vector<9x9xf32> to vector<9xf32>
    %38 = vector.shape_cast %37 : vector<9xf32> to vector<9x1xf32>
    %39 = tpu.reciprocal %38 {approx = true} : vector<9x1xf32> -> vector<9x1xf32>
    %40 = vector.broadcast %39 : vector<9x1xf32> to vector<9x9xf32>
    %41 = arith.mulf %36, %40 : vector<9x9xf32>
    %42 = arith.truncf %41 : vector<9x9xf32> to vector<9x9xbf16>
    %cst_10 = arith.constant dense<0.000000e+00> : vector<9x8xf32>
    %43 = tpu.matmul %42, %30, %cst_10 {dimension_numbers = #tpu.dot_dimension_numbers<[1], [0], [0], [1], [0, 0, 1, 1], [], []>} : vector<9x9xbf16>, vector<9x8xbf16>, vector<9x8xf32> -> vector<9x8xf32>
    %44 = vector.extract_strided_slice %1 {offsets = [0, 16], sizes = [9, 8], strides = [1, 1]} : vector<9x96xf32> to vector<9x8xf32>
    %cst_11 = arith.constant 0.353553385 : f32
    %45 = vector.broadcast %cst_11 : f32 to vector<9x8xf32>
    %46 = arith.mulf %44, %45 : vector<9x8xf32>
    %47 = arith.truncf %46 : vector<9x8xf32> to vector<9x8xbf16>
    %48 = vector.extract_strided_slice %1 {offsets = [0, 48], sizes = [9, 8], strides = [1, 1]} : vector<9x96xf32> to vector<9x8xf32>
    %49 = arith.truncf %48 : vector<9x8xf32> to vector<9x8xbf16>
    %50 = vector.extract_strided_slice %1 {offsets = [0, 80], sizes = [9, 8], strides = [1, 1]} : vector<9x96xf32> to vector<9x8xf32>
    %51 = arith.truncf %50 : vector<9x8xf32> to vector<9x8xbf16>
    %cst_12 = arith.constant dense<0.000000e+00> : vector<9x9xf32>
    %52 = tpu.matmul %47, %49, %cst_12 {dimension_numbers = #tpu.dot_dimension_numbers<[1], [1], [0], [0], [0, 0, 1, 0], [], []>} : vector<9x8xbf16>, vector<9x8xbf16>, vector<9x9xf32> -> vector<9x9xf32>
    %cst_13 = arith.constant dense<0xFF800000> : vector<9xf32>
    %53 = vector.multi_reduction <maximumf>, %52, %cst_13 [1] : vector<9x9xf32> to vector<9xf32>
    %54 = vector.shape_cast %53 : vector<9xf32> to vector<9x1xf32>
    %55 = vector.broadcast %54 : vector<9x1xf32> to vector<9x9xf32>
    %56 = arith.subf %52, %55 : vector<9x9xf32>
    %57 = math.exp %56 : vector<9x9xf32>
    %cst_14 = arith.constant dense<0.000000e+00> : vector<9xf32>
    %58 = vector.multi_reduction <add>, %57, %cst_14 [1] : vector<9x9xf32> to vector<9xf32>
    %59 = vector.shape_cast %58 : vector<9xf32> to vector<9x1xf32>
    %60 = tpu.reciprocal %59 {approx = true} : vector<9x1xf32> -> vector<9x1xf32>
    %61 = vector.broadcast %60 : vector<9x1xf32> to vector<9x9xf32>
    %62 = arith.mulf %57, %61 : vector<9x9xf32>
    %63 = arith.truncf %62 : vector<9x9xf32> to vector<9x9xbf16>
    %cst_15 = arith.constant dense<0.000000e+00> : vector<9x8xf32>
    %64 = tpu.matmul %63, %51, %cst_15 {dimension_numbers = #tpu.dot_dimension_numbers<[1], [0], [0], [1], [0, 0, 1, 1], [], []>} : vector<9x9xbf16>, vector<9x8xbf16>, vector<9x8xf32> -> vector<9x8xf32>
    %65 = vector.extract_strided_slice %1 {offsets = [0, 24], sizes = [9, 8], strides = [1, 1]} : vector<9x96xf32> to vector<9x8xf32>
    %cst_16 = arith.constant 0.353553385 : f32
    %66 = vector.broadcast %cst_16 : f32 to vector<9x8xf32>
    %67 = arith.mulf %65, %66 : vector<9x8xf32>
    %68 = arith.truncf %67 : vector<9x8xf32> to vector<9x8xbf16>
    %69 = vector.extract_strided_slice %1 {offsets = [0, 56], sizes = [9, 8], strides = [1, 1]} : vector<9x96xf32> to vector<9x8xf32>
    %70 = arith.truncf %69 : vector<9x8xf32> to vector<9x8xbf16>
    %71 = vector.extract_strided_slice %1 {offsets = [0, 88], sizes = [9, 8], strides = [1, 1]} : vector<9x96xf32> to vector<9x8xf32>
    %72 = arith.truncf %71 : vector<9x8xf32> to vector<9x8xbf16>
    %cst_17 = arith.constant dense<0.000000e+00> : vector<9x9xf32>
    %73 = tpu.matmul %68, %70, %cst_17 {dimension_numbers = #tpu.dot_dimension_numbers<[1], [1], [0], [0], [0, 0, 1, 0], [], []>} : vector<9x8xbf16>, vector<9x8xbf16>, vector<9x9xf32> -> vector<9x9xf32>
    %cst_18 = arith.constant dense<0xFF800000> : vector<9xf32>
    %74 = vector.multi_reduction <maximumf>, %73, %cst_18 [1] : vector<9x9xf32> to vector<9xf32>
    %75 = vector.shape_cast %74 : vector<9xf32> to vector<9x1xf32>
    %76 = vector.broadcast %75 : vector<9x1xf32> to vector<9x9xf32>
    %77 = arith.subf %73, %76 : vector<9x9xf32>
    %78 = math.exp %77 : vector<9x9xf32>
    %cst_19 = arith.constant dense<0.000000e+00> : vector<9xf32>
    %79 = vector.multi_reduction <add>, %78, %cst_19 [1] : vector<9x9xf32> to vector<9xf32>
    %80 = vector.shape_cast %79 : vector<9xf32> to vector<9x1xf32>
    %81 = tpu.reciprocal %80 {approx = true} : vector<9x1xf32> -> vector<9x1xf32>
    %82 = vector.broadcast %81 : vector<9x1xf32> to vector<9x9xf32>
    %83 = arith.mulf %78, %82 : vector<9x9xf32>
    %84 = arith.truncf %83 : vector<9x9xf32> to vector<9x9xbf16>
    %cst_20 = arith.constant dense<0.000000e+00> : vector<9x8xf32>
    %85 = tpu.matmul %84, %72, %cst_20 {dimension_numbers = #tpu.dot_dimension_numbers<[1], [0], [0], [1], [0, 0, 1, 1], [], []>} : vector<9x9xbf16>, vector<9x8xbf16>, vector<9x8xf32> -> vector<9x8xf32>
    %86 = tpu.concatenate %22, %43, %64, %85 in 1 : vector<9x8xf32>, vector<9x8xf32>, vector<9x8xf32>, vector<9x8xf32> -> vector<9x32xf32>
    %c0_21 = arith.constant 0 : index
    %c0_22 = arith.constant 0 : index
    %c0_23 = arith.constant 0 : index
    %87 = vector.load %arg2[%c0_21, %c0_22, %c0_23] : memref<1x9x32xf32, #tpu.memory_space<vmem>>, vector<1x9x32xf32>
    %88 = vector.shape_cast %87 : vector<1x9x32xf32> to vector<9x32xf32>
    %89 = vector.shape_cast %86 : vector<9x32xf32> to vector<1x9x32xf32>
    tpu.vector_store %arg2[%c0_21, %c0_22, %c0_23], %89 {strides = array<i32>} : memref<1x9x32xf32, #tpu.memory_space<vmem>>, vector<1x9x32xf32>,
    return
  }
  func.func @transform_0(%arg0: i32) -> (i32, i32, i32) {
    %c0_i32 = arith.constant 0 : i32
    %c0_i32_0 = arith.constant 0 : i32
    %c0_i32_1 = arith.constant 0 : i32
    return %arg0, %c0_i32, %c0_i32_0 : i32, i32, i32
  }
  func.func @transform_1(%arg0: i32) -> (i32, i32, i32) {
    %c0_i32 = arith.constant 0 : i32
    %c0_i32_0 = arith.constant 0 : i32
    %c0_i32_1 = arith.constant 0 : i32
    return %arg0, %c0_i32, %c0_i32_0 : i32, i32, i32
  }
}

module attributes {stable_mosaic.version = 11 : i64} {
  func.func @_fused_linear_kernel(%arg0: i32, %arg1: i32, %arg2: i32, %arg3: memref<24x32xf32, #tpu.memory_space<vmem>>, %arg4: memref<32x128xbf16, #tpu.memory_space<vmem>>, %arg5: memref<1x128xf32, #tpu.memory_space<vmem>>, %arg6: memref<1x32xf32, #tpu.memory_space<vmem>>, %arg7: memref<1x32xf32, #tpu.memory_space<vmem>>, %arg8: memref<24x128xf32, #tpu.memory_space<vmem>>, %arg9: memref<24x128xf32, #tpu.memory_space<vmem>>) attributes {dimension_semantics = [#tpu.dimension_semantics<parallel>, #tpu.dimension_semantics<parallel>, #tpu.dimension_semantics<arbitrary>], iteration_bounds = array<i64: 1, 1, 1>, scalar_prefetch = 0 : i64, scratch_operands = 1 : i64, tpu.core_type = #tpu.core_type<tc>, window_params = [{transform_indices = @transform_0, window_bounds = array<i64: 24, 32>}, {transform_indices = @transform_1, window_bounds = array<i64: 32, 128>}, {transform_indices = @transform_2, window_bounds = array<i64: 1, 128>}, {pipeline_mode = #tpu.pipeline_mode<synchronous>, transform_indices = @transform_3, window_bounds = array<i64: 1, 32>}, {pipeline_mode = #tpu.pipeline_mode<synchronous>, transform_indices = @transform_4, window_bounds = array<i64: 1, 32>}, {transform_indices = @transform_5, window_bounds = array<i64: 24, 128>}]} {
    %c0_i32 = arith.constant 0 : i32
    %0 = arith.cmpi eq, %arg2, %c0_i32 : i32
    %1 = arith.extui %0 : i1 to i32
    %c0_i32_0 = arith.constant 0 : i32
    %2 = arith.cmpi ne, %1, %c0_i32_0 : i32
    scf.if %2 {
      %cst_19 = arith.constant 0.000000e+00 : f32
      %35 = vector.broadcast %cst_19 : f32 to vector<24x128xf32>
      %c0_20 = arith.constant 0 : index
      %c0_21 = arith.constant 0 : index
      %36 = vector.load %arg9[%c0_20, %c0_21] : memref<24x128xf32, #tpu.memory_space<vmem>>, vector<24x128xf32>
      tpu.vector_store %arg9[%c0_20, %c0_21], %35 {strides = array<i32>} : memref<24x128xf32, #tpu.memory_space<vmem>>, vector<24x128xf32>,
    } else {
    }
    %c0 = arith.constant 0 : index
    %c0_1 = arith.constant 0 : index
    %3 = vector.load %arg3[%c0, %c0_1] : memref<24x32xf32, #tpu.memory_space<vmem>>, vector<24x32xf32>
    %cst = arith.constant dense<0.000000e+00> : vector<24xf32>
    %4 = vector.multi_reduction <add>, %3, %cst [1] : vector<24x32xf32> to vector<24xf32>
    %5 = vector.shape_cast %4 : vector<24xf32> to vector<24x1xf32>
    %cst_2 = arith.constant 3.200000e+01 : f32
    %6 = vector.broadcast %cst_2 : f32 to vector<24x1xf32>
    %7 = arith.divf %5, %6 : vector<24x1xf32>
    %8 = vector.broadcast %7 : vector<24x1xf32> to vector<24x32xf32>
    %9 = arith.subf %3, %8 : vector<24x32xf32>
    %10 = arith.mulf %9, %9 : vector<24x32xf32>
    %cst_3 = arith.constant dense<0.000000e+00> : vector<24xf32>
    %11 = vector.multi_reduction <add>, %10, %cst_3 [1] : vector<24x32xf32> to vector<24xf32>
    %12 = vector.shape_cast %11 : vector<24xf32> to vector<24x1xf32>
    %cst_4 = arith.constant 3.200000e+01 : f32
    %13 = vector.broadcast %cst_4 : f32 to vector<24x1xf32>
    %14 = arith.divf %12, %13 : vector<24x1xf32>
    %cst_5 = arith.constant 9.99999997E-7 : f32
    %15 = vector.broadcast %cst_5 : f32 to vector<24x1xf32>
    %16 = arith.addf %14, %15 : vector<24x1xf32>
    %17 = math.rsqrt %16 : vector<24x1xf32>
    %18 = vector.broadcast %17 : vector<24x1xf32> to vector<24x32xf32>
    %19 = arith.mulf %9, %18 : vector<24x32xf32>
    %c0_6 = arith.constant 0 : index
    %c0_7 = arith.constant 0 : index
    %20 = vector.load %arg6[%c0_6, %c0_7] : memref<1x32xf32, #tpu.memory_space<vmem>>, vector<1x32xf32>
    %21 = vector.broadcast %20 : vector<1x32xf32> to vector<24x32xf32>
    %22 = arith.mulf %19, %21 : vector<24x32xf32>
    %c0_8 = arith.constant 0 : index
    %c0_9 = arith.constant 0 : index
    %23 = vector.load %arg7[%c0_8, %c0_9] : memref<1x32xf32, #tpu.memory_space<vmem>>, vector<1x32xf32>
    %24 = vector.broadcast %23 : vector<1x32xf32> to vector<24x32xf32>
    %25 = arith.addf %22, %24 : vector<24x32xf32>
    %26 = arith.truncf %25 : vector<24x32xf32> to vector<24x32xbf16>
    %c0_10 = arith.constant 0 : index
    %c0_11 = arith.constant 0 : index
    %27 = vector.load %arg9[%c0_10, %c0_11] : memref<24x128xf32, #tpu.memory_space<vmem>>, vector<24x128xf32>
    %c0_12 = arith.constant 0 : index
    %c0_13 = arith.constant 0 : index
    %28 = vector.load %arg4[%c0_12, %c0_13] : memref<32x128xbf16, #tpu.memory_space<vmem>>, vector<32x128xbf16>
    %cst_14 = arith.constant dense<0.000000e+00> : vector<24x128xf32>
    %29 = tpu.matmul %26, %28, %cst_14 {dimension_numbers = #tpu.dot_dimension_numbers<[1], [0], [0], [1], [0, 0, 1, 1], [], []>} : vector<24x32xbf16>, vector<32x128xbf16>, vector<24x128xf32> -> vector<24x128xf32>
    %30 = arith.addf %27, %29 : vector<24x128xf32>
    %c0_15 = arith.constant 0 : index
    %c0_16 = arith.constant 0 : index
    %31 = vector.load %arg9[%c0_15, %c0_16] : memref<24x128xf32, #tpu.memory_space<vmem>>, vector<24x128xf32>
    tpu.vector_store %arg9[%c0_15, %c0_16], %30 {strides = array<i32>} : memref<24x128xf32, #tpu.memory_space<vmem>>, vector<24x128xf32>,
    %c0_i32_17 = arith.constant 0 : i32
    %32 = arith.cmpi eq, %arg2, %c0_i32_17 : i32
    %33 = arith.extui %32 : i1 to i32
    %c0_i32_18 = arith.constant 0 : i32
    %34 = arith.cmpi ne, %33, %c0_i32_18 : i32
    scf.if %34 {
      %c0_19 = arith.constant 0 : index
      %c0_20 = arith.constant 0 : index
      %35 = vector.load %arg9[%c0_19, %c0_20] : memref<24x128xf32, #tpu.memory_space<vmem>>, vector<24x128xf32>
      %c0_21 = arith.constant 0 : index
      %c0_22 = arith.constant 0 : index
      %36 = vector.load %arg5[%c0_21, %c0_22] : memref<1x128xf32, #tpu.memory_space<vmem>>, vector<1x128xf32>
      %37 = vector.broadcast %36 : vector<1x128xf32> to vector<24x128xf32>
      %38 = arith.addf %35, %37 : vector<24x128xf32>
      %c0_23 = arith.constant 0 : index
      %c0_24 = arith.constant 0 : index
      %39 = vector.load %arg8[%c0_23, %c0_24] : memref<24x128xf32, #tpu.memory_space<vmem>>, vector<24x128xf32>
      tpu.vector_store %arg8[%c0_23, %c0_24], %38 {strides = array<i32>} : memref<24x128xf32, #tpu.memory_space<vmem>>, vector<24x128xf32>,
    } else {
    }
    return
  }
  func.func @transform_0(%arg0: i32, %arg1: i32, %arg2: i32) -> (i32, i32) {
    %c0_i32 = arith.constant 0 : i32
    return %arg0, %arg2 : i32, i32
  }
  func.func @transform_1(%arg0: i32, %arg1: i32, %arg2: i32) -> (i32, i32) {
    %c0_i32 = arith.constant 0 : i32
    return %arg2, %arg1 : i32, i32
  }
  func.func @transform_2(%arg0: i32, %arg1: i32, %arg2: i32) -> (i32, i32) {
    %c0_i32 = arith.constant 0 : i32
    %c0_i32_0 = arith.constant 0 : i32
    return %c0_i32, %arg1 : i32, i32
  }
  func.func @transform_3(%arg0: i32, %arg1: i32, %arg2: i32) -> (i32, i32) {
    %c0_i32 = arith.constant 0 : i32
    %c0_i32_0 = arith.constant 0 : i32
    %c0_i32_1 = arith.constant 0 : i32
    return %c0_i32, %c0_i32_0 : i32, i32
  }
  func.func @transform_4(%arg0: i32, %arg1: i32, %arg2: i32) -> (i32, i32) {
    %c0_i32 = arith.constant 0 : i32
    %c0_i32_0 = arith.constant 0 : i32
    %c0_i32_1 = arith.constant 0 : i32
    return %c0_i32, %c0_i32_0 : i32, i32
  }
  func.func @transform_5(%arg0: i32, %arg1: i32, %arg2: i32) -> (i32, i32) {
    %c0_i32 = arith.constant 0 : i32
    return %arg0, %arg1 : i32, i32
  }
}

module attributes {stable_mosaic.version = 11 : i64} {
  func.func @_fused_linear_kernel(%arg0: i32, %arg1: i32, %arg2: i32, %arg3: memref<24x128xbf16, #tpu.memory_space<vmem>>, %arg4: memref<128x128xbf16, #tpu.memory_space<vmem>>, %arg5: memref<1x128xf32, #tpu.memory_space<vmem>>, %arg6: memref<24x128xf32, #tpu.memory_space<vmem>>, %arg7: memref<24x128xf32, #tpu.memory_space<vmem>>, %arg8: memref<24x128xf32, #tpu.memory_space<vmem>>) attributes {dimension_semantics = [#tpu.dimension_semantics<parallel>, #tpu.dimension_semantics<parallel>, #tpu.dimension_semantics<arbitrary>], iteration_bounds = array<i64: 1, 1, 1>, scalar_prefetch = 0 : i64, scratch_operands = 1 : i64, tpu.core_type = #tpu.core_type<tc>, window_params = [{transform_indices = @transform_0, window_bounds = array<i64: 24, 128>}, {transform_indices = @transform_1, window_bounds = array<i64: 128, 128>}, {transform_indices = @transform_2, window_bounds = array<i64: 1, 128>}, {transform_indices = @transform_3, window_bounds = array<i64: 24, 128>}, {transform_indices = @transform_4, window_bounds = array<i64: 24, 128>}]} {
    %c0_i32 = arith.constant 0 : i32
    %0 = arith.cmpi eq, %arg2, %c0_i32 : i32
    %1 = arith.extui %0 : i1 to i32
    %c0_i32_0 = arith.constant 0 : i32
    %2 = arith.cmpi ne, %1, %c0_i32_0 : i32
    scf.if %2 {
      %cst_10 = arith.constant 0.000000e+00 : f32
      %12 = vector.broadcast %cst_10 : f32 to vector<24x128xf32>
      %c0_11 = arith.constant 0 : index
      %c0_12 = arith.constant 0 : index
      %13 = vector.load %arg8[%c0_11, %c0_12] : memref<24x128xf32, #tpu.memory_space<vmem>>, vector<24x128xf32>
      tpu.vector_store %arg8[%c0_11, %c0_12], %12 {strides = array<i32>} : memref<24x128xf32, #tpu.memory_space<vmem>>, vector<24x128xf32>,
    } else {
    }
    %c0 = arith.constant 0 : index
    %c0_1 = arith.constant 0 : index
    %3 = vector.load %arg3[%c0, %c0_1] : memref<24x128xbf16, #tpu.memory_space<vmem>>, vector<24x128xbf16>
    %c0_2 = arith.constant 0 : index
    %c0_3 = arith.constant 0 : index
    %4 = vector.load %arg8[%c0_2, %c0_3] : memref<24x128xf32, #tpu.memory_space<vmem>>, vector<24x128xf32>
    %c0_4 = arith.constant 0 : index
    %c0_5 = arith.constant 0 : index
    %5 = vector.load %arg4[%c0_4, %c0_5] : memref<128x128xbf16, #tpu.memory_space<vmem>>, vector<128x128xbf16>
    %cst = arith.constant dense<0.000000e+00> : vector<24x128xf32>
    %6 = tpu.matmul %3, %5, %cst {dimension_numbers = #tpu.dot_dimension_numbers<[1], [0], [0], [1], [0, 0, 1, 1], [], []>} : vector<24x128xbf16>, vector<128x128xbf16>, vector<24x128xf32> -> vector<24x128xf32>
    %7 = arith.addf %4, %6 : vector<24x128xf32>
    %c0_6 = arith.constant 0 : index
    %c0_7 = arith.constant 0 : index
    %8 = vector.load %arg8[%c0_6, %c0_7] : memref<24x128xf32, #tpu.memory_space<vmem>>, vector<24x128xf32>
    tpu.vector_store %arg8[%c0_6, %c0_7], %7 {strides = array<i32>} : memref<24x128xf32, #tpu.memory_space<vmem>>, vector<24x128xf32>,
    %c0_i32_8 = arith.constant 0 : i32
    %9 = arith.cmpi eq, %arg2, %c0_i32_8 : i32
    %10 = arith.extui %9 : i1 to i32
    %c0_i32_9 = arith.constant 0 : i32
    %11 = arith.cmpi ne, %10, %c0_i32_9 : i32
    scf.if %11 {
      %c0_10 = arith.constant 0 : index
      %c0_11 = arith.constant 0 : index
      %12 = vector.load %arg8[%c0_10, %c0_11] : memref<24x128xf32, #tpu.memory_space<vmem>>, vector<24x128xf32>
      %c0_12 = arith.constant 0 : index
      %c0_13 = arith.constant 0 : index
      %13 = vector.load %arg5[%c0_12, %c0_13] : memref<1x128xf32, #tpu.memory_space<vmem>>, vector<1x128xf32>
      %14 = vector.broadcast %13 : vector<1x128xf32> to vector<24x128xf32>
      %15 = arith.addf %12, %14 : vector<24x128xf32>
      %c0_14 = arith.constant 0 : index
      %c0_15 = arith.constant 0 : index
      %16 = vector.load %arg6[%c0_14, %c0_15] : memref<24x128xf32, #tpu.memory_space<vmem>>, vector<24x128xf32>
      %17 = arith.addf %15, %16 : vector<24x128xf32>
      %c0_16 = arith.constant 0 : index
      %c0_17 = arith.constant 0 : index
      %18 = vector.load %arg7[%c0_16, %c0_17] : memref<24x128xf32, #tpu.memory_space<vmem>>, vector<24x128xf32>
      tpu.vector_store %arg7[%c0_16, %c0_17], %17 {strides = array<i32>} : memref<24x128xf32, #tpu.memory_space<vmem>>, vector<24x128xf32>,
    } else {
    }
    return
  }
  func.func @transform_0(%arg0: i32, %arg1: i32, %arg2: i32) -> (i32, i32) {
    %c0_i32 = arith.constant 0 : i32
    return %arg0, %arg2 : i32, i32
  }
  func.func @transform_1(%arg0: i32, %arg1: i32, %arg2: i32) -> (i32, i32) {
    %c0_i32 = arith.constant 0 : i32
    return %arg2, %arg1 : i32, i32
  }
  func.func @transform_2(%arg0: i32, %arg1: i32, %arg2: i32) -> (i32, i32) {
    %c0_i32 = arith.constant 0 : i32
    %c0_i32_0 = arith.constant 0 : i32
    return %c0_i32, %arg1 : i32, i32
  }
  func.func @transform_3(%arg0: i32, %arg1: i32, %arg2: i32) -> (i32, i32) {
    %c0_i32 = arith.constant 0 : i32
    return %arg0, %arg1 : i32, i32
  }
  func.func @transform_4(%arg0: i32, %arg1: i32, %arg2: i32) -> (i32, i32) {
    %c0_i32 = arith.constant 0 : i32
    return %arg0, %arg1 : i32, i32
  }
}

module attributes {stable_mosaic.version = 11 : i64} {
  func.func @_fused_linear_kernel(%arg0: i32, %arg1: i32, %arg2: i32, %arg3: memref<24x32xf32, #tpu.memory_space<vmem>>, %arg4: memref<32x128xbf16, #tpu.memory_space<vmem>>, %arg5: memref<1x128xf32, #tpu.memory_space<vmem>>, %arg6: memref<1x32xf32, #tpu.memory_space<vmem>>, %arg7: memref<1x32xf32, #tpu.memory_space<vmem>>, %arg8: memref<24x128xf32, #tpu.memory_space<vmem>>, %arg9: memref<24x128xf32, #tpu.memory_space<vmem>>) attributes {dimension_semantics = [#tpu.dimension_semantics<parallel>, #tpu.dimension_semantics<parallel>, #tpu.dimension_semantics<arbitrary>], iteration_bounds = array<i64: 1, 1, 1>, scalar_prefetch = 0 : i64, scratch_operands = 1 : i64, tpu.core_type = #tpu.core_type<tc>, window_params = [{transform_indices = @transform_0, window_bounds = array<i64: 24, 32>}, {transform_indices = @transform_1, window_bounds = array<i64: 32, 128>}, {transform_indices = @transform_2, window_bounds = array<i64: 1, 128>}, {pipeline_mode = #tpu.pipeline_mode<synchronous>, transform_indices = @transform_3, window_bounds = array<i64: 1, 32>}, {pipeline_mode = #tpu.pipeline_mode<synchronous>, transform_indices = @transform_4, window_bounds = array<i64: 1, 32>}, {transform_indices = @transform_5, window_bounds = array<i64: 24, 128>}]} {
    %c0_i32 = arith.constant 0 : i32
    %0 = arith.cmpi eq, %arg2, %c0_i32 : i32
    %1 = arith.extui %0 : i1 to i32
    %c0_i32_0 = arith.constant 0 : i32
    %2 = arith.cmpi ne, %1, %c0_i32_0 : i32
    scf.if %2 {
      %cst_19 = arith.constant 0.000000e+00 : f32
      %35 = vector.broadcast %cst_19 : f32 to vector<24x128xf32>
      %c0_20 = arith.constant 0 : index
      %c0_21 = arith.constant 0 : index
      %36 = vector.load %arg9[%c0_20, %c0_21] : memref<24x128xf32, #tpu.memory_space<vmem>>, vector<24x128xf32>
      tpu.vector_store %arg9[%c0_20, %c0_21], %35 {strides = array<i32>} : memref<24x128xf32, #tpu.memory_space<vmem>>, vector<24x128xf32>,
    } else {
    }
    %c0 = arith.constant 0 : index
    %c0_1 = arith.constant 0 : index
    %3 = vector.load %arg3[%c0, %c0_1] : memref<24x32xf32, #tpu.memory_space<vmem>>, vector<24x32xf32>
    %cst = arith.constant dense<0.000000e+00> : vector<24xf32>
    %4 = vector.multi_reduction <add>, %3, %cst [1] : vector<24x32xf32> to vector<24xf32>
    %5 = vector.shape_cast %4 : vector<24xf32> to vector<24x1xf32>
    %cst_2 = arith.constant 3.200000e+01 : f32
    %6 = vector.broadcast %cst_2 : f32 to vector<24x1xf32>
    %7 = arith.divf %5, %6 : vector<24x1xf32>
    %8 = vector.broadcast %7 : vector<24x1xf32> to vector<24x32xf32>
    %9 = arith.subf %3, %8 : vector<24x32xf32>
    %10 = arith.mulf %9, %9 : vector<24x32xf32>
    %cst_3 = arith.constant dense<0.000000e+00> : vector<24xf32>
    %11 = vector.multi_reduction <add>, %10, %cst_3 [1] : vector<24x32xf32> to vector<24xf32>
    %12 = vector.shape_cast %11 : vector<24xf32> to vector<24x1xf32>
    %cst_4 = arith.constant 3.200000e+01 : f32
    %13 = vector.broadcast %cst_4 : f32 to vector<24x1xf32>
    %14 = arith.divf %12, %13 : vector<24x1xf32>
    %cst_5 = arith.constant 9.99999997E-7 : f32
    %15 = vector.broadcast %cst_5 : f32 to vector<24x1xf32>
    %16 = arith.addf %14, %15 : vector<24x1xf32>
    %17 = math.rsqrt %16 : vector<24x1xf32>
    %18 = vector.broadcast %17 : vector<24x1xf32> to vector<24x32xf32>
    %19 = arith.mulf %9, %18 : vector<24x32xf32>
    %c0_6 = arith.constant 0 : index
    %c0_7 = arith.constant 0 : index
    %20 = vector.load %arg6[%c0_6, %c0_7] : memref<1x32xf32, #tpu.memory_space<vmem>>, vector<1x32xf32>
    %21 = vector.broadcast %20 : vector<1x32xf32> to vector<24x32xf32>
    %22 = arith.mulf %19, %21 : vector<24x32xf32>
    %c0_8 = arith.constant 0 : index
    %c0_9 = arith.constant 0 : index
    %23 = vector.load %arg7[%c0_8, %c0_9] : memref<1x32xf32, #tpu.memory_space<vmem>>, vector<1x32xf32>
    %24 = vector.broadcast %23 : vector<1x32xf32> to vector<24x32xf32>
    %25 = arith.addf %22, %24 : vector<24x32xf32>
    %26 = arith.truncf %25 : vector<24x32xf32> to vector<24x32xbf16>
    %c0_10 = arith.constant 0 : index
    %c0_11 = arith.constant 0 : index
    %27 = vector.load %arg9[%c0_10, %c0_11] : memref<24x128xf32, #tpu.memory_space<vmem>>, vector<24x128xf32>
    %c0_12 = arith.constant 0 : index
    %c0_13 = arith.constant 0 : index
    %28 = vector.load %arg4[%c0_12, %c0_13] : memref<32x128xbf16, #tpu.memory_space<vmem>>, vector<32x128xbf16>
    %cst_14 = arith.constant dense<0.000000e+00> : vector<24x128xf32>
    %29 = tpu.matmul %26, %28, %cst_14 {dimension_numbers = #tpu.dot_dimension_numbers<[1], [0], [0], [1], [0, 0, 1, 1], [], []>} : vector<24x32xbf16>, vector<32x128xbf16>, vector<24x128xf32> -> vector<24x128xf32>
    %30 = arith.addf %27, %29 : vector<24x128xf32>
    %c0_15 = arith.constant 0 : index
    %c0_16 = arith.constant 0 : index
    %31 = vector.load %arg9[%c0_15, %c0_16] : memref<24x128xf32, #tpu.memory_space<vmem>>, vector<24x128xf32>
    tpu.vector_store %arg9[%c0_15, %c0_16], %30 {strides = array<i32>} : memref<24x128xf32, #tpu.memory_space<vmem>>, vector<24x128xf32>,
    %c0_i32_17 = arith.constant 0 : i32
    %32 = arith.cmpi eq, %arg2, %c0_i32_17 : i32
    %33 = arith.extui %32 : i1 to i32
    %c0_i32_18 = arith.constant 0 : i32
    %34 = arith.cmpi ne, %33, %c0_i32_18 : i32
    scf.if %34 {
      %c0_19 = arith.constant 0 : index
      %c0_20 = arith.constant 0 : index
      %35 = vector.load %arg9[%c0_19, %c0_20] : memref<24x128xf32, #tpu.memory_space<vmem>>, vector<24x128xf32>
      %c0_21 = arith.constant 0 : index
      %c0_22 = arith.constant 0 : index
      %36 = vector.load %arg5[%c0_21, %c0_22] : memref<1x128xf32, #tpu.memory_space<vmem>>, vector<1x128xf32>
      %37 = vector.broadcast %36 : vector<1x128xf32> to vector<24x128xf32>
      %38 = arith.addf %35, %37 : vector<24x128xf32>
      %39 = arith.mulf %38, %38 : vector<24x128xf32>
      %40 = arith.mulf %38, %39 : vector<24x128xf32>
      %cst_23 = arith.constant 4.471500e-02 : f32
      %41 = vector.broadcast %cst_23 : f32 to vector<24x128xf32>
      %42 = arith.mulf %41, %40 : vector<24x128xf32>
      %43 = arith.addf %38, %42 : vector<24x128xf32>
      %cst_24 = arith.constant 0.797884583 : f32
      %44 = vector.broadcast %cst_24 : f32 to vector<24x128xf32>
      %45 = arith.mulf %44, %43 : vector<24x128xf32>
      %46 = math.tanh %45 : vector<24x128xf32>
      %cst_25 = arith.constant 1.000000e+00 : f32
      %47 = vector.broadcast %cst_25 : f32 to vector<24x128xf32>
      %48 = arith.addf %47, %46 : vector<24x128xf32>
      %cst_26 = arith.constant 5.000000e-01 : f32
      %49 = vector.broadcast %cst_26 : f32 to vector<24x128xf32>
      %50 = arith.mulf %49, %48 : vector<24x128xf32>
      %51 = arith.mulf %38, %50 : vector<24x128xf32>
      %c0_27 = arith.constant 0 : index
      %c0_28 = arith.constant 0 : index
      %52 = vector.load %arg8[%c0_27, %c0_28] : memref<24x128xf32, #tpu.memory_space<vmem>>, vector<24x128xf32>
      tpu.vector_store %arg8[%c0_27, %c0_28], %51 {strides = array<i32>} : memref<24x128xf32, #tpu.memory_space<vmem>>, vector<24x128xf32>,
    } else {
    }
    return
  }
  func.func @transform_0(%arg0: i32, %arg1: i32, %arg2: i32) -> (i32, i32) {
    %c0_i32 = arith.constant 0 : i32
    return %arg0, %arg2 : i32, i32
  }
  func.func @transform_1(%arg0: i32, %arg1: i32, %arg2: i32) -> (i32, i32) {
    %c0_i32 = arith.constant 0 : i32
    return %arg2, %arg1 : i32, i32
  }
  func.func @transform_2(%arg0: i32, %arg1: i32, %arg2: i32) -> (i32, i32) {
    %c0_i32 = arith.constant 0 : i32
    %c0_i32_0 = arith.constant 0 : i32
    return %c0_i32, %arg1 : i32, i32
  }
  func.func @transform_3(%arg0: i32, %arg1: i32, %arg2: i32) -> (i32, i32) {
    %c0_i32 = arith.constant 0 : i32
    %c0_i32_0 = arith.constant 0 : i32
    %c0_i32_1 = arith.constant 0 : i32
    return %c0_i32, %c0_i32_0 : i32, i32
  }
  func.func @transform_4(%arg0: i32, %arg1: i32, %arg2: i32) -> (i32, i32) {
    %c0_i32 = arith.constant 0 : i32
    %c0_i32_0 = arith.constant 0 : i32
    %c0_i32_1 = arith.constant 0 : i32
    return %c0_i32, %c0_i32_0 : i32, i32
  }
  func.func @transform_5(%arg0: i32, %arg1: i32, %arg2: i32) -> (i32, i32) {
    %c0_i32 = arith.constant 0 : i32
    return %arg0, %arg1 : i32, i32
  }
}

module attributes {stable_mosaic.version = 11 : i64} {
  func.func @_layernorm_kernel(%arg0: i32, %arg1: memref<24x32xf32, #tpu.memory_space<vmem>>, %arg2: memref<1x32xf32, #tpu.memory_space<vmem>>, %arg3: memref<1x32xf32, #tpu.memory_space<vmem>>, %arg4: memref<24x32xf32, #tpu.memory_space<vmem>>) attributes {dimension_semantics = [#tpu.dimension_semantics<parallel>], iteration_bounds = array<i64: 1>, scalar_prefetch = 0 : i64, scratch_operands = 0 : i64, tpu.core_type = #tpu.core_type<tc>, window_params = [{transform_indices = @transform_0, window_bounds = array<i64: 24, 32>}, {pipeline_mode = #tpu.pipeline_mode<synchronous>, transform_indices = @transform_1, window_bounds = array<i64: 1, 32>}, {pipeline_mode = #tpu.pipeline_mode<synchronous>, transform_indices = @transform_2, window_bounds = array<i64: 1, 32>}, {transform_indices = @transform_3, window_bounds = array<i64: 24, 32>}]} {
    %c0 = arith.constant 0 : index
    %c0_0 = arith.constant 0 : index
    %0 = vector.load %arg1[%c0, %c0_0] : memref<24x32xf32, #tpu.memory_space<vmem>>, vector<24x32xf32>
    %cst = arith.constant dense<0.000000e+00> : vector<24xf32>
    %1 = vector.multi_reduction <add>, %0, %cst [1] : vector<24x32xf32> to vector<24xf32>
    %2 = vector.shape_cast %1 : vector<24xf32> to vector<24x1xf32>
    %cst_1 = arith.constant 3.200000e+01 : f32
    %3 = vector.broadcast %cst_1 : f32 to vector<24x1xf32>
    %4 = arith.divf %2, %3 : vector<24x1xf32>
    %5 = vector.broadcast %4 : vector<24x1xf32> to vector<24x32xf32>
    %6 = arith.subf %0, %5 : vector<24x32xf32>
    %7 = arith.mulf %6, %6 : vector<24x32xf32>
    %cst_2 = arith.constant dense<0.000000e+00> : vector<24xf32>
    %8 = vector.multi_reduction <add>, %7, %cst_2 [1] : vector<24x32xf32> to vector<24xf32>
    %9 = vector.shape_cast %8 : vector<24xf32> to vector<24x1xf32>
    %cst_3 = arith.constant 3.200000e+01 : f32
    %10 = vector.broadcast %cst_3 : f32 to vector<24x1xf32>
    %11 = arith.divf %9, %10 : vector<24x1xf32>
    %cst_4 = arith.constant 9.99999997E-7 : f32
    %12 = vector.broadcast %cst_4 : f32 to vector<24x1xf32>
    %13 = arith.addf %11, %12 : vector<24x1xf32>
    %14 = math.rsqrt %13 : vector<24x1xf32>
    %15 = vector.broadcast %14 : vector<24x1xf32> to vector<24x32xf32>
    %16 = arith.mulf %6, %15 : vector<24x32xf32>
    %c0_5 = arith.constant 0 : index
    %c0_6 = arith.constant 0 : index
    %17 = vector.load %arg2[%c0_5, %c0_6] : memref<1x32xf32, #tpu.memory_space<vmem>>, vector<1x32xf32>
    %18 = vector.broadcast %17 : vector<1x32xf32> to vector<24x32xf32>
    %19 = arith.mulf %16, %18 : vector<24x32xf32>
    %c0_7 = arith.constant 0 : index
    %c0_8 = arith.constant 0 : index
    %20 = vector.load %arg3[%c0_7, %c0_8] : memref<1x32xf32, #tpu.memory_space<vmem>>, vector<1x32xf32>
    %21 = vector.broadcast %20 : vector<1x32xf32> to vector<24x32xf32>
    %22 = arith.addf %19, %21 : vector<24x32xf32>
    %c0_9 = arith.constant 0 : index
    %c0_10 = arith.constant 0 : index
    %23 = vector.load %arg4[%c0_9, %c0_10] : memref<24x32xf32, #tpu.memory_space<vmem>>, vector<24x32xf32>
    tpu.vector_store %arg4[%c0_9, %c0_10], %22 {strides = array<i32>} : memref<24x32xf32, #tpu.memory_space<vmem>>, vector<24x32xf32>,
    return
  }
  func.func @transform_0(%arg0: i32) -> (i32, i32) {
    %c0_i32 = arith.constant 0 : i32
    %c0_i32_0 = arith.constant 0 : i32
    return %arg0, %c0_i32 : i32, i32
  }
  func.func @transform_1(%arg0: i32) -> (i32, i32) {
    %c0_i32 = arith.constant 0 : i32
    %c0_i32_0 = arith.constant 0 : i32
    %c0_i32_1 = arith.constant 0 : i32
    return %c0_i32, %c0_i32_0 : i32, i32
  }
  func.func @transform_2(%arg0: i32) -> (i32, i32) {
    %c0_i32 = arith.constant 0 : i32
    %c0_i32_0 = arith.constant 0 : i32
    %c0_i32_1 = arith.constant 0 : i32
    return %c0_i32, %c0_i32_0 : i32, i32
  }
  func.func @transform_3(%arg0: i32) -> (i32, i32) {
    %c0_i32 = arith.constant 0 : i32
    %c0_i32_0 = arith.constant 0 : i32
    return %arg0, %c0_i32 : i32, i32
  }
}

module attributes {stable_mosaic.version = 11 : i64} {
  func.func @_resize_kernel(%arg0: i32, %arg1: memref<196x4xf32, #tpu.memory_space<vmem>>, %arg2: memref<1x4x32xf32, #tpu.memory_space<vmem>>, %arg3: memref<1x196x32xf32, #tpu.memory_space<vmem>>) attributes {dimension_semantics = [#tpu.dimension_semantics<parallel>], iteration_bounds = array<i64: 2>, scalar_prefetch = 0 : i64, scratch_operands = 0 : i64, tpu.core_type = #tpu.core_type<tc>, window_params = [{pipeline_mode = #tpu.pipeline_mode<synchronous>, transform_indices = @transform_0, window_bounds = array<i64: 196, 4>}, {transform_indices = @transform_1, window_bounds = array<i64: 1, 4, 32>}, {transform_indices = @transform_2, window_bounds = array<i64: 1, 196, 32>}]} {
    %c0 = arith.constant 0 : index
    %c0_0 = arith.constant 0 : index
    %0 = vector.load %arg1[%c0, %c0_0] : memref<196x4xf32, #tpu.memory_space<vmem>>, vector<196x4xf32>
    %c0_1 = arith.constant 0 : index
    %c0_2 = arith.constant 0 : index
    %c0_3 = arith.constant 0 : index
    %1 = vector.load %arg2[%c0_1, %c0_2, %c0_3] : memref<1x4x32xf32, #tpu.memory_space<vmem>>, vector<1x4x32xf32>
    %2 = vector.shape_cast %1 : vector<1x4x32xf32> to vector<4x32xf32>
    %cst = arith.constant dense<0.000000e+00> : vector<196x32xf32>
    %3 = tpu.matmul %0, %2, %cst {dimension_numbers = #tpu.dot_dimension_numbers<[1], [0], [0], [1], [0, 0, 1, 1], [], []>} : vector<196x4xf32>, vector<4x32xf32>, vector<196x32xf32> -> vector<196x32xf32>
    %c0_4 = arith.constant 0 : index
    %c0_5 = arith.constant 0 : index
    %c0_6 = arith.constant 0 : index
    %4 = vector.load %arg3[%c0_4, %c0_5, %c0_6] : memref<1x196x32xf32, #tpu.memory_space<vmem>>, vector<1x196x32xf32>
    %5 = vector.shape_cast %4 : vector<1x196x32xf32> to vector<196x32xf32>
    %6 = vector.shape_cast %3 : vector<196x32xf32> to vector<1x196x32xf32>
    tpu.vector_store %arg3[%c0_4, %c0_5, %c0_6], %6 {strides = array<i32>} : memref<1x196x32xf32, #tpu.memory_space<vmem>>, vector<1x196x32xf32>,
    return
  }
  func.func @transform_0(%arg0: i32) -> (i32, i32) {
    %c0_i32 = arith.constant 0 : i32
    %c0_i32_0 = arith.constant 0 : i32
    %c0_i32_1 = arith.constant 0 : i32
    return %c0_i32, %c0_i32_0 : i32, i32
  }
  func.func @transform_1(%arg0: i32) -> (i32, i32, i32) {
    %c0_i32 = arith.constant 0 : i32
    %c0_i32_0 = arith.constant 0 : i32
    %c0_i32_1 = arith.constant 0 : i32
    return %arg0, %c0_i32, %c0_i32_0 : i32, i32, i32
  }
  func.func @transform_2(%arg0: i32) -> (i32, i32, i32) {
    %c0_i32 = arith.constant 0 : i32
    %c0_i32_0 = arith.constant 0 : i32
    %c0_i32_1 = arith.constant 0 : i32
    return %arg0, %c0_i32, %c0_i32_0 : i32, i32, i32
  }
}

</mosaic_0001>

<bundles_post_ra>
// kernel: _lambda_.9
= control target key start
LH: loop header
LB: loop body
LE: loop exit
PB: predicated region body
PF: predicated region fallthrough
CT: control target
= control target key end

     0   :  { %vm31_vm0 = vcmask 261120   ;;  %s294_s0 = inlined_call_operand.vmem [shape: f32[24,32], index: 0, kind: input, shape index: {}]   ;;  %s295_s1 = inlined_call_operand.vmem [shape: bf16[32,128], index: 1, kind: input, shape index: {}]   ;;  %s296_s3 = inlined_call_operand.vmem [shape: f32[1,32], index: 3, kind: input, shape index: {}]   ;;  %s297_s4 = inlined_call_operand.vmem [shape: f32[1,32], index: 4, kind: input, shape index: {}]   ;;  %s298_s2 = inlined_call_operand.vmem [shape: f32[1,128], index: 2, kind: input, shape index: {}]   ;;  %s299_s5 = inlined_call_operand.vmem [shape: f32[24,128], index: 5, kind: output, shape index: {}]  }
   0x1   :  { %v28_v0 = vld [vmem:[%s294_s0] sm:$0xff]  ;;  %v30_v1 = vld [vmem:[%s294_s0 + $0x10] sm:$0xff]  ;;  %v29_v2 = vld [vmem:[%s294_s0 + $0x8] sm:$0xff] }
   0x2   :  { %v32_v3 = vsel %vm31_vm0, %v28_v0, 0.0  ;;  %v38_v4 = vsel %vm31_vm0, %v30_v1, 0.0  ;;  %v35_v5 = vsel %vm31_vm0, %v29_v2, 0.0  ;;  %v215_v21 = vld [vmem:[%s295_s1] sm:$0xff]   ;;  %v216_v22 = vld [vmem:[%s295_s1 + $0x8] sm:$0xff]  }
   0x3   :  { %33 = vadd.xlane.f32.xlu0 %v32_v3  ;;  %39 = vadd.xlane.f32.xlu1 %v38_v4  ;;  %v196_v34 = vld [vmem:[%s296_s3] ss:$0 sm:$0xff] }
   0x4   :  { %207 = vmatprep.subr.bf16.mxu0 %v215_v21  ;;  %v197_v40 = vld [vmem:[%s297_s4] ss:$0 sm:$0xff] }
   0x5   :  { %208 = vmatpush3.bf16.msra.mxu0 %v215_v21  ;;  %v202_v48 = vld [vmem:[%s298_s2] ss:$0 sm:$0xff] }
   0x6   :  { %209 = vmatprep.subr.bf16.mxu0 %v216_v22 }
   0x7   :  { %36 = vadd.xlane.f32.xlu0 %v35_v5 }
   0x9   :  { %210 = vmatpush3.bf16.msra.mxu0 %v216_v22 }
  0x90   :  { %v34_v6 = vpop.xlane.xlu0 %33  ;;  %v40_v7 = vpop.xlane.xlu1 %39 }
  0x91   :  { %v42_v8 = vmul.f32 0.03125, %v34_v6  ;;  %v44_v9 = vmul.f32 0.03125, %v40_v7 }
  0x93   :  { %v45_v10 = vsub.f32 %v28_v0, %v42_v8  ;;  %v47_v11 = vsub.f32 %v30_v1, %v44_v9 }
  0x94   :  { %v37_v12 = vpop.xlane.xlu0 %36 }
  0x95   :  { %v43_v13 = vmul.f32 0.03125, %v37_v12  ;;  %v48_v14 = vmul.f32 %v45_v10, %v45_v10  ;;  %v50_v15 = vmul.f32 %v47_v11, %v47_v11 }
  0x97   :  { %v46_v16 = vsub.f32 %v29_v2, %v43_v13  ;;  %v51_v17 = vsel %vm31_vm0, %v48_v14, 0.0  ;;  %v57_v18 = vsel %vm31_vm0, %v50_v15, 0.0 }
  0x98   :  { %52 = vadd.xlane.f32.xlu1 %v51_v17 }
  0x99   :  { %v49_v19 = vmul.f32 %v46_v16, %v46_v16 }
  0x9b   :  { %v54_v20 = vsel %vm31_vm0, %v49_v19, 0.0 }
  0x9c   :  { %58 = vadd.xlane.f32.xlu1 %v57_v18  ;;  %55 = vadd.xlane.f32.xlu0 %v54_v20 }
 0x125   :  { %v53_v23 = vpop.xlane.xlu1 %52 }
 0x126   :  { %v60_v24 = vmul.f32 0.03125, %v53_v23 }
 0x128   :  { %v63_v25 = vadd.f32 1e-06, %v60_v24 }
 0x129   :  { %v59_v26 = vpop.xlane.xlu1 %58  ;;  %v56_v27 = vpop.xlane.xlu0 %55 }
 0x12a   :  { %217 = vrsqrt.f32 %v63_v25  ;;  %v62_v28 = vmul.f32 0.03125, %v59_v26  ;;  %v61_v29 = vmul.f32 0.03125, %v56_v27 }
 0x12c   :  { %v65_v30 = vadd.f32 1e-06, %v62_v28  ;;  %v64_v31 = vadd.f32 1e-06, %v61_v29 }
 0x12e   :  { %219 = vrsqrt.f32 %v65_v30 }
 0x12f   :  { %221 = vrsqrt.f32 %v64_v31 }
 0x134   :  { %v218_v32 = vpop.eup %217 }
 0x135   :  { %v69_v33 = vmul.f32 %v218_v32, %v45_v10 }
 0x137   :  { %v79_v39 = vmul.f32 %v196_v34, %v69_v33 }
 0x138   :  { %v220_v35 = vpop.eup %219 }
 0x139   :  { %v222_v36 = vpop.eup %221  ;;  %v71_v37 = vmul.f32 %v220_v35, %v47_v11  ;;  %v89_v44 = vadd.f32 %v197_v40, %v79_v39 }
 0x13a   :  { %v70_v38 = vmul.f32 %v222_v36, %v46_v16 }
 0x13b   :  { %v81_v41 = vmul.f32 %v196_v34, %v71_v37 }
 0x13c   :  { %v80_v42 = vmul.f32 %v196_v34, %v70_v38 }
 0x13d   :  { %v91_v43 = vadd.f32 %v197_v40, %v81_v41 }
 0x13e   :  { %v90_v45 = vadd.f32 %v197_v40, %v80_v42 }
 0x13f   :  { %v93_v46 = vpack.c.bf16 %v91_v43, %v91_v43 }
 0x140   :  { %v92_v47 = vpack.c.bf16 %v90_v45, %v89_v44 }
 0x142   :  { %211 = vmatprep.mubr.msk.bf16.mxu0 %vm31_vm0, %v92_v47 }
 0x143   :  { %212 = vmatmul.mubr.msk.bf16.vlgmr.msra.gmra.mrb[0].mxu0 %vm31_vm0, %v93_v46 }
 0x216   :  { %v213_v49 = vpop.f32.mrb[0].mxu0 }
 0x217   :  { %v188_v50 = vadd.f32 %v213_v49, %v202_v48  ;;  %v153_v51 = vpop.f32.mrb[1].mxu0 }
 0x218   :  { %v186_v52 = vadd.f32 %v202_v48, %v153_v51  ;;  %v214_v53 = vpop.f32.mrb[2].mxu0 }
 0x219   :  { %191 = vst [vmem:[%s299_s5 + $0x10] sm:$0xff] %v188_v50  ;;  %v156_v54 = vpop.f32.mrb[3].mxu0 }
 0x21a   :  { %189 = vst [vmem:[%s299_s5] sm:$0xff] %v186_v52  ;;  %v187_v55 = vadd.f32 %v202_v48, %v156_v54 }
 0x21c   :  { %190 = vst [vmem:[%s299_s5 + $0x8] sm:$0xff] %v187_v55 }

// kernel: _lambda_.10
= control target key start
LH: loop header
LB: loop body
LE: loop exit
PB: predicated region body
PF: predicated region fallthrough
CT: control target
= control target key end

     0   :  { %s891_s6 = smov 0   ;;  %s991_s0 = inlined_call_operand.vmem [shape: f32[2,9,96], index: 0, kind: input, shape index: {}]   ;;  %s992_s1 = inlined_call_operand.vmem [shape: f32[2,9,32], index: 1, kind: output, shape index: {}]  }
   0x1 LB: > { %s714_s7 = sadd.s32 4294967295, %s862_s6   ;;  %p718_p0 = scmp.ge.s32.totalorder %s862_s6, 1  ;;  %s862_s6 = sphi %s891_s6, %s11_s6  }
   0x2   : > { %p87_p1 = scmp.lt.s32.totalorder %s862_s6, 3 }
   0x4   : > { %p88_p2 = pnand %p718_p0, %p87_p1 }
   0x5   : > { %p107_p3 = scmp.lt.s32.totalorder (!%p88_p2), %s714_s7, 1  ;;  %v864_v0 = vmov (!%p88_p2), 0.0   ;;  %vm865_vm0 = vmmov (!%p88_p2), 0   ;;  %s866_s12 = smov (!%p88_p2), 96   ;;  %vm127_vm1 = vcmask (!%p88_p2), 64512   ;;  %vm175_vm2 = vcmask (!%p88_p2), 72704  }
   0x6   : > { %91 = sbr.rel (%p88_p2) target bundleno = 1561 (0x619), region = 24  ;;  %751 = vmatprep.subr.bf16.mxu0 (!%p88_p2), %v864_v0  ;;  %753 = vmatprep.mubr.msk.bf16.mxu0 (!%p88_p2), %vm865_vm0, %v864_v0  ;;  %vm179_vm3 = vcmask (!%p88_p2), 65536   ;;  %s867_s13 = smov (!%p88_p2), 64   ;;  %vm205_vm4 = vcmask (!%p88_p2), 1043456   ;;  %vm206_vm5 = vcmask (!%p88_p2), 1044480   ;;  %v869_v17 = vmov (!%p88_p2), 65535  }
   0x7   : > { %757 = vmatprep.subr.bf16.mxu1 (!%p88_p2), %v864_v0  ;;  %759 = vmatprep.mubr.msk.bf16.mxu1 (!%p88_p2), %vm865_vm0, %v864_v0  ;;  %s868_s14 = smov (!%p88_p2), 80   ;;  %v207_v18 = vsel (!%p88_p2), %vm205_vm4, 4294967295, %v869_v17  ;;  %s870_s15 = smov (!%p88_p2), 88   ;;  %vm649_vm6 = vcmask (!%p88_p2), 130048   ;;  %vm652_vm7 = vcmask (!%p88_p2), 195584   ;;  %vm655_vm8 = vcmask (!%p88_p2), 261120  }
   0x8   : > { %v925_v22 = vsel (!%p88_p2), %vm206_vm5, %v207_v18, 0  ;;  %s871_s16 = smov (!%p88_p2), 120   ;;  %s872_s17 = smov (!%p88_p2), 112   ;;  %vm657_vm9 = vcmask (!%p88_p2), 253952  }
   0x9   : > { %s873_s18 = smov (!%p88_p2), 72   ;;  %s874_s19 = smov (!%p88_p2), 104  }
   0xa   : > { %s875_s20 = smov (!%p88_p2), 56   ;;  %s876_s21 = smov (!%p88_p2), 40  }
   0xb   : > { %s877_s22 = smov (!%p88_p2), 48   ;;  %s878_s23 = smov (!%p88_p2), 8  }
   0xc   : > { %s879_s24 = smov (!%p88_p2), 16   ;;  %s880_s25 = smov (!%p88_p2), 24  }
   0xd   : > { %s994_s7 = smov (!%p107_p3, %s714_s7), 1 }
   0xe   : > { %s733_s8 = sshll.u32 %s994_s7, 4 }
   0xf   : > { %s111_s11 = scalar_lea.vmem %s991_s0, %s733_s8  ;;  %s116_s28 = scalar_lea.vmem %s992_s1, %s733_s8 }
  0x10   : > { %v118_v1 = vld [vmem:[%s111_s11] sm:$0xff]  ;;  %v119_v2 = vld [vmem:[%s111_s11 + $0x8] sm:$0x1] }
  0x11   : > { %v913_v3 = vpack.c.bf16 %v119_v2, %v118_v1  ;;  %v120_v4 = vmul.f32 0.35355338, %v118_v1  ;;  %v121_v5 = vmul.f32 0.35355338, %v119_v2 }
  0x13   : > { %125 = vrot.lane.b32.xlu0 %v913_v3, %s866_s12  ;;  %v122_v6 = vpack.c.bf16 %v121_v5, %v120_v4 }
  0x85   : > { %v126_v7 = vpop.permute.xlu0 %125 }
  0x86   : > { %v132_v8 = vsel %vm127_vm1, %v126_v7, 0 }
  0x87   : > { %752 = vmatpush3.bf16.xpose.msra.mxu0 %v132_v8 }
  0x88   : > { %769 = vmatprep.subr.bf16.mxu0 %v864_v0 }
  0x8e   : > { %754 = vmatmul.mubr.msk.bf16.vlgmr.msra.gmra.mrb[0].mxu0 %vm127_vm1, %v122_v6 }
  0x8f   : > { %771 = vmatprep.mubr.msk.bf16.mxu0 %vm865_vm0, %v864_v0 }
 0x161   : > { %v168_v9 = vpop.f32.mrb[0].mxu0 }
 0x162   : > { %v755_v10 = vpop.f32.mrb[1].mxu0  ;;  %v176_v11 = vsel %vm175_vm2, %v168_v9, -inf }
 0x163   : > { %177 = vmax.xlane.f32.xlu0 %v176_v11  ;;  %v171_v12 = vpop.f32.mrb[2].mxu0 }
 0x164   : > { %v756_v13 = vpop.f32.mrb[3].mxu0  ;;  %v180_v14 = vsel %vm179_vm3, %v171_v12, -inf }
 0x165   : > { %181 = vmax.xlane.f32.xlu1 %v180_v14 }
 0x176   : > { %200 = vrot.lane.b32.xlu1 %v913_v3, %s867_s13 }
 0x179   : > { %379 = vrot.lane.b32.xlu0 %v913_v3, %s868_s14 }
 0x1f0   : > { %v178_v15 = vpop.xlane.xlu0 %177 }
 0x1f1   : > { %v183_v16 = vsub.f32 %v168_v9, %v178_v15 }
 0x1f2   : > { %v182_v19 = vpop.xlane.xlu1 %181 }
 0x1f3   : > { %v185_v20 = vmul.f32 1.442695, %v183_v16  ;;  %v184_v21 = vsub.f32 %v171_v12, %v182_v19 }
 0x1f4   : > { %v380_v40 = vpop.permute.xlu0 %379 }
 0x1f5   : > { %824 = vpow2.f32 %v185_v20  ;;  %v187_v23 = vmul.f32 1.442695, %v184_v21  ;;  %v385_v42 = vsel %vm127_vm1, %v380_v40, 0 }
 0x1f6   : > { %v201_v24 = vpop.permute.xlu1 %200 }
 0x1f7   : > { %826 = vpow2.f32 %v187_v23  ;;  %v210_v25 = vand.u32 %v925_v22, %v201_v24 }
 0x1f9   : > { %758 = vmatpush3.bf16.msra.mxu1 %v210_v25 }
 0x1fa   : > { %763 = vmatprep.subr.bf16.mxu1 %v864_v0 }
 0x1ff   : > { %v825_v26 = vpop.eup %824 }
 0x200   : > { %v189_v27 = vsel %vm175_vm2, %v825_v26, 0.0 }
 0x201   : > { %v827_v28 = vpop.eup %826  ;;  %190 = vadd.xlane.f32.xlu1 %v189_v27 }
 0x202   : > { %v192_v29 = vsel %vm179_vm3, %v827_v28, 0.0 }
 0x205   : > { %193 = vadd.xlane.f32.xlu1 %v192_v29 }
 0x216   : > { %256 = vrot.lane.b32.xlu1 %v913_v3, %s870_s15 }
 0x21a   : > { %254 = vrot.lane.b32.xlu1 %v122_v6, %s871_s16 }
 0x21e   : > { %377 = vrot.lane.b32.xlu1 %v122_v6, %s872_s17 }
 0x222   : > { %502 = vrot.lane.b32.xlu1 %v913_v3, %s873_s18 }
 0x226   : > { %500 = vrot.lane.b32.xlu1 %v122_v6, %s874_s19 }
 0x28e   : > { %v191_v30 = vpop.xlane.xlu1 %190 }
 0x28f   : > { %828 = vrcp.f32 %v191_v30 }
 0x292   : > { %v194_v31 = vpop.xlane.xlu1 %193 }
 0x293   : > { %830 = vrcp.f32 %v194_v31 }
 0x296   : > { %v257_v34 = vpop.permute.xlu1 %256 }
 0x297   : > { %v262_v37 = vsel %vm127_vm1, %v257_v34, 0 }
 0x299   : > { %v829_v32 = vpop.eup %828 }
 0x29a   : > { %v197_v35 = vmul.f32 %v829_v32, %v825_v26  ;;  %v255_v39 = vpop.permute.xlu1 %254 }
 0x29d   : > { %v831_v33 = vpop.eup %830 }
 0x29e   : > { %v198_v36 = vmul.f32 %v831_v33, %v827_v28  ;;  %v378_v41 = vpop.permute.xlu1 %377 }
 0x2a0   : > { %v199_v38 = vpack.c.bf16 %v198_v36, %v197_v35 }
 0x2a2   : > { %760 = vmatmul.mubr.msk.bf16.vlgmr.msra.gmra.mrb[0].mxu1 %vm175_vm2, %v199_v38  ;;  %v503_v43 = vpop.permute.xlu1 %502 }
 0x2a3   : > { %764 = vmatpush3.bf16.xpose.msra.mxu1 %v262_v37  ;;  %765 = vmatprep.mubr.msk.bf16.mxu1 %vm865_vm0, %v864_v0  ;;  %v508_v44 = vsel %vm127_vm1, %v503_v43, 0 }
 0x2a4   : > { %775 = vmatprep.subr.bf16.mxu1 %v864_v0 }
 0x2a6   : > { %v501_v45 = vpop.permute.xlu1 %500 }
 0x2aa   : > { %766 = vmatmul.mubr.msk.bf16.vlgmr.msra.gmra.mrb[4].mxu1 %vm127_vm1, %v255_v39 }
 0x2ab   : > { %776 = vmatpush3.bf16.xpose.msra.mxu1 %v385_v42  ;;  %777 = vmatprep.mubr.msk.bf16.mxu1 %vm865_vm0, %v864_v0 }
 0x2ac   : > { %787 = vmatprep.subr.bf16.mxu1 %v864_v0 }
 0x2b2   : > { %778 = vmatmul.mubr.msk.bf16.vlgmr.msra.gmra.mrb[8].mxu1 %vm127_vm1, %v378_v41 }
 0x2b3   : > { %788 = vmatpush3.bf16.xpose.msra.mxu1 %v508_v44  ;;  %789 = vmatprep.mubr.msk.bf16.mxu1 %vm865_vm0, %v864_v0 }
 0x2ba   : > { %790 = vmatmul.mubr.msk.bf16.vlgmr.msra.gmra.mrb[12].mxu1 %vm127_vm1, %v501_v45 }
 0x375   : > { %v948_v46 = vpop.f32.mrb[0].mxu1 }
 0x376   : > { %v761_v47 = vpop.f32.mrb[1].mxu1 }
 0x377   : > { %v950_v48 = vpop.f32.mrb[2].mxu1 }
 0x378   : > { %v762_v49 = vpop.f32.mrb[3].mxu1 }
 0x37d   : > { %v298_v50 = vpop.f32.mrb[4].mxu1 }
 0x37e   : > { %v767_v51 = vpop.f32.mrb[5].mxu1  ;;  %v305_v52 = vsel %vm175_vm2, %v298_v50, -inf }
 0x37f   : > { %306 = vmax.xlane.f32.xlu1 %v305_v52  ;;  %v301_v53 = vpop.f32.mrb[6].mxu1 }
 0x380   : > { %v768_v54 = vpop.f32.mrb[7].mxu1  ;;  %v308_v55 = vsel %vm179_vm3, %v301_v53, -inf }
 0x381   : > { %309 = vmax.xlane.f32.xlu0 %v308_v55 }
 0x385   : > { %v421_v56 = vpop.f32.mrb[8].mxu1 }
 0x386   : > { %v779_v57 = vpop.f32.mrb[9].mxu1  ;;  %v428_v58 = vsel %vm175_vm2, %v421_v56, -inf }
 0x387   : > { %429 = vmax.xlane.f32.xlu1 %v428_v58  ;;  %v424_v59 = vpop.f32.mrb[10].mxu1 }
 0x388   : > { %v780_v60 = vpop.f32.mrb[11].mxu1  ;;  %v431_v61 = vsel %vm179_vm3, %v424_v59, -inf }
 0x389   : > { %432 = vmax.xlane.f32.xlu0 %v431_v61 }
 0x38d   : > { %v544_v62 = vpop.f32.mrb[12].mxu1 }
 0x38e   : > { %v791_v63 = vpop.f32.mrb[13].mxu1  ;;  %v551_v1 = vsel %vm175_vm2, %v544_v62, -inf }
 0x38f   : > { %552 = vmax.xlane.f32.xlu1 %v551_v1  ;;  %v547_v2 = vpop.f32.mrb[14].mxu1 }
 0x390   : > { %v792_v4 = vpop.f32.mrb[15].mxu1  ;;  %v554_v5 = vsel %vm179_vm3, %v547_v2, -inf }
 0x391   : > { %555 = vmax.xlane.f32.xlu0 %v554_v5 }
 0x3a0   : > { %328 = vrot.lane.b32.xlu1 %v913_v3, %s875_s20 }
 0x40c   : > { %v307_v6 = vpop.xlane.xlu1 %306 }
 0x40d   : > { %v311_v7 = vsub.f32 %v298_v50, %v307_v6 }
 0x40e   : > { %v310_v8 = vpop.xlane.xlu0 %309 }
 0x40f   : > { %v313_v9 = vmul.f32 1.442695, %v311_v7  ;;  %v312_v10 = vsub.f32 %v301_v53, %v310_v8 }
 0x411   : > { %832 = vpow2.f32 %v313_v9  ;;  %v315_v11 = vmul.f32 1.442695, %v312_v10 }
 0x413   : > { %834 = vpow2.f32 %v315_v11 }
 0x414   : > { %v430_v12 = vpop.xlane.xlu1 %429 }
 0x415   : > { %v434_v13 = vsub.f32 %v421_v56, %v430_v12 }
 0x416   : > { %v433_v14 = vpop.xlane.xlu0 %432 }
 0x417   : > { %v436_v15 = vmul.f32 1.442695, %v434_v13  ;;  %v435_v16 = vsub.f32 %v424_v59, %v433_v14 }
 0x419   : > { %836 = vpow2.f32 %v436_v15  ;;  %v438_v17 = vmul.f32 1.442695, %v435_v16 }
 0x41b   : > { %v833_v18 = vpop.eup %832  ;;  %838 = vpow2.f32 %v438_v17 }
 0x41c   : > { %v553_v19 = vpop.xlane.xlu1 %552  ;;  %v317_v20 = vsel %vm175_vm2, %v833_v18, 0.0 }
 0x41d   : > { %v835_v21 = vpop.eup %834  ;;  %v557_v23 = vsub.f32 %v544_v62, %v553_v19  ;;  %318 = vadd.xlane.f32.xlu1 %v317_v20 }
 0x41e   : > { %v556_v24 = vpop.xlane.xlu0 %555  ;;  %v320_v25 = vsel %vm179_vm3, %v835_v21, 0.0 }
 0x41f   : > { %v559_v26 = vmul.f32 1.442695, %v557_v23  ;;  %v558_v27 = vsub.f32 %v547_v2, %v556_v24  ;;  %321 = vadd.xlane.f32.xlu0 %v320_v25 }
 0x420   : > { %v329_v28 = vpop.permute.xlu1 %328 }
 0x421   : > { %840 = vpow2.f32 %v559_v26  ;;  %v561_v29 = vmul.f32 1.442695, %v558_v27  ;;  %v334_v30 = vand.u32 %v329_v28, %v925_v22 }
 0x423   : > { %v837_v31 = vpop.eup %836  ;;  %842 = vpow2.f32 %v561_v29  ;;  %770 = vmatpush3.bf16.msra.mxu0 %v334_v30 }
 0x424   : > { %v440_v32 = vsel %vm175_vm2, %v837_v31, 0.0  ;;  %781 = vmatprep.subr.bf16.mxu0 %v864_v0 }
 0x425   : > { %v839_v33 = vpop.eup %838  ;;  %441 = vadd.xlane.f32.xlu1 %v440_v32 }
 0x426   : > { %v443_v34 = vsel %vm179_vm3, %v839_v33, 0.0 }
 0x427   : > { %444 = vadd.xlane.f32.xlu0 %v443_v34 }
 0x42b   : > { %v841_v35 = vpop.eup %840 }
 0x42c   : > { %v563_v36 = vsel %vm175_vm2, %v841_v35, 0.0 }
 0x42d   : > { %v843_v37 = vpop.eup %842  ;;  %564 = vadd.xlane.f32.xlu1 %v563_v36 }
 0x42e   : > { %v566_v38 = vsel %vm179_vm3, %v843_v37, 0.0 }
 0x42f   : > { %567 = vadd.xlane.f32.xlu0 %v566_v38 }
 0x43e   : > { %574 = vrot.lane.b32.xlu1 %v913_v3, %s876_s21 }
 0x445   : > { %451 = vrot.lane.b32.xlu0 %v913_v3, %s877_s22 }
 0x4aa   : > { %v319_v39 = vpop.xlane.xlu1 %318 }
 0x4ab   : > { %844 = vrcp.f32 %v319_v39 }
 0x4ac   : > { %v322_v40 = vpop.xlane.xlu0 %321 }
 0x4ad   : > { %846 = vrcp.f32 %v322_v40 }
 0x4b2   : > { %v442_v41 = vpop.xlane.xlu1 %441 }
 0x4b3   : > { %848 = vrcp.f32 %v442_v41 }
 0x4b4   : > { %v445_v42 = vpop.xlane.xlu0 %444 }
 0x4b5   : > { %v845_v43 = vpop.eup %844  ;;  %850 = vrcp.f32 %v445_v42 }
 0x4b6   : > { %v325_v45 = vmul.f32 %v845_v43, %v833_v18 }
 0x4b7   : > { %v847_v44 = vpop.eup %846 }
 0x4b8   : > { %v326_v47 = vmul.f32 %v847_v44, %v835_v21 }
 0x4ba   : > { %v565_v49 = vpop.xlane.xlu1 %564  ;;  %v327_v50 = vpack.c.bf16 %v326_v47, %v325_v45 }
 0x4bb   : > { %852 = vrcp.f32 %v565_v49 }
 0x4bc   : > { %v568_v51 = vpop.xlane.xlu0 %567  ;;  %772 = vmatmul.mubr.msk.bf16.vlgmr.msra.gmra.mrb[4].mxu0 %vm175_vm2, %v327_v50 }
 0x4bd   : > { %854 = vrcp.f32 %v568_v51  ;;  %783 = vmatprep.mubr.msk.bf16.mxu0 %vm865_vm0, %v864_v0  ;;  %v849_v3 = vpop.eup %848 }
 0x4be   : > { %v575_v55 = vpop.permute.xlu1 %574  ;;  %v448_v57 = vmul.f32 %v849_v3, %v837_v31 }
 0x4bf   : > { %v851_v52 = vpop.eup %850  ;;  %v580_v58 = vand.u32 %v575_v55, %v925_v22 }
 0x4c0   : > { %v449_v53 = vmul.f32 %v851_v52, %v839_v33  ;;  %v452_v54 = vpop.permute.xlu0 %451 }
 0x4c1   : > { %v457_v56 = vand.u32 %v452_v54, %v925_v22 }
 0x4c2   : > { %v450_v59 = vpack.c.bf16 %v449_v53, %v448_v57 }
 0x4c3   : > { %782 = vmatpush3.bf16.msra.mxu0 %v457_v56 }
 0x4c4   : > { %793 = vmatprep.subr.bf16.mxu0 %v864_v0 }
 0x4c5   : > { %v853_v60 = vpop.eup %852 }
 0x4c6   : > { %784 = vmatmul.mubr.msk.bf16.vlgmr.msra.gmra.mrb[8].mxu0 %vm175_vm2, %v450_v59  ;;  %v571_v63 = vmul.f32 %v853_v60, %v841_v35 }
 0x4c7   : > { %v855_v61 = vpop.eup %854  ;;  %794 = vmatpush3.bf16.msra.mxu0 %v580_v58  ;;  %795 = vmatprep.mubr.msk.bf16.mxu0 %vm865_vm0, %v864_v0 }
 0x4c8   : > { %v572_v62 = vmul.f32 %v855_v61, %v843_v37 }
 0x4ca   : > { %v573_v1 = vpack.c.bf16 %v572_v62, %v571_v63 }
 0x4ce   : > { %796 = vmatmul.mubr.msk.bf16.vlgmr.msra.gmra.mrb[12].mxu0 %vm175_vm2, %v573_v1 }
 0x58f   : > { %v370_v2 = vpop.f32.mrb[4].mxu0 }
 0x590   : > { %625 = vrot.lane.b32.xlu1 %v370_v2, %s878_s23  ;;  %v773_v22 = vpop.f32.mrb[5].mxu0 }
 0x591   : > { %v373_v4 = vpop.f32.mrb[6].mxu0 }
 0x592   : > { %627 = vrot.lane.b32.xlu0 %v373_v4, %s878_s23  ;;  %v774_v5 = vpop.f32.mrb[7].mxu0 }
 0x599   : > { %v493_v6 = vpop.f32.mrb[8].mxu0 }
 0x59a   : > { %633 = vrot.lane.b32.xlu1 %v493_v6, %s879_s24  ;;  %v785_v7 = vpop.f32.mrb[9].mxu0 }
 0x59b   : > { %v496_v8 = vpop.f32.mrb[10].mxu0 }
 0x59c   : > { %635 = vrot.lane.b32.xlu0 %v496_v8, %s879_s24  ;;  %v786_v0 = vpop.f32.mrb[11].mxu0 }
 0x5a1   : > { %v616_v9 = vpop.f32.mrb[12].mxu0 }
 0x5a2   : > { %641 = vrot.lane.b32.xlu1 %v616_v9, %s880_s25  ;;  %v797_v10 = vpop.f32.mrb[13].mxu0 }
 0x5a3   : > { %v619_v11 = vpop.f32.mrb[14].mxu0 }
 0x5a4   : > { %643 = vrot.lane.b32.xlu0 %v619_v11, %s880_s25  ;;  %v798_v12 = vpop.f32.mrb[15].mxu0 }
 0x602   : > { %v626_v13 = vpop.permute.xlu1 %625 }
 0x603   : > { %v647_v17 = vsel %vm127_vm1, %v948_v46, %v626_v13 }
 0x604   : > { %v628_v14 = vpop.permute.xlu0 %627 }
 0x605   : > { %v648_v20 = vsel %vm127_vm1, %v950_v48, %v628_v14 }
 0x60c   : > { %v634_v15 = vpop.permute.xlu1 %633 }
 0x60d   : > { %v650_v18 = vsel %vm649_vm6, %v647_v17, %v634_v15 }
 0x60e   : > { %v636_v16 = vpop.permute.xlu0 %635 }
 0x60f   : > { %v651_v23 = vsel %vm649_vm6, %v648_v20, %v636_v16 }
 0x614   : > { %v642_v19 = vpop.permute.xlu1 %641 }
 0x615   : > { %v653_v21 = vsel %vm652_vm7, %v650_v18, %v642_v19 }
 0x616   : > { %656 = vst.msk [vmem:[%s116_s28] sm:$0xff] %vm655_vm8, %v653_v21  ;;  %v644_v24 = vpop.permute.xlu0 %643 }
 0x617   : > { %v654_v25 = vsel %vm652_vm7, %v651_v23, %v644_v24 }
 0x618   : > { %658 = vst.msk [vmem:[%s116_s28 + $0x8] sm:$0x1] %vm657_vm9, %v654_v25 }
 0x619 PF: > { %s11_s6 = sadd.s32 1, %s862_s6  }
 0x61a   : > { %p8_p4 = scmp.ge.s32.totalorder %s11_s6, 4  }
 0x61c   :  { %10 = sbr.rel (!%p8_p4) target bundleno = 1 (0x1), region = 54 }

// kernel: _lambda_.8
= control target key start
LH: loop header
LB: loop body
LE: loop exit
PB: predicated region body
PF: predicated region fallthrough
CT: control target
= control target key end

     0   :  { %v667_v36 = vmov 0.0   ;;  %vm668_vm0 = vmmov 0   ;;  %s824_s1 = inlined_call_operand.vmem [shape: bf16[640,128], index: 1, kind: input, shape index: {}]   ;;  %s825_s0 = inlined_call_operand.vmem [shape: bf16[8,640], index: 0, kind: input, shape index: {}]   ;;  %s826_s2 = inlined_call_operand.vmem [shape: f32[1,128], index: 2, kind: input, shape index: {}]   ;;  %s827_s3 = inlined_call_operand.vmem [shape: f32[8,128], index: 3, kind: output, shape index: {}]  }
   0x1   :  { %v622_v0 = vld [vmem:[%s824_s1 + $0x40] sm:$0xff]   ;;  %v626_v4 = vld [vmem:[%s824_s1 + $0x48] sm:$0xff]   ;;  %v630_v8 = vld [vmem:[%s824_s1 + $0x50] sm:$0xff]  }
   0x2   :  { %v623_v1 = vld [vmem:[%s824_s1 + $0xc0] sm:$0xff]   ;;  %547 = vmatprep.subr.bf16.mxu0 %v622_v0  ;;  %v627_v5 = vld [vmem:[%s824_s1 + $0xc8] sm:$0xff]   ;;  %v631_v9 = vld [vmem:[%s824_s1 + $0xd0] sm:$0xff]  }
   0x3   :  { %v624_v2 = vld [vmem:[%s824_s1] sm:$0xff]   ;;  %569 = vmatprep.subr.bf16.mxu1 %v623_v1  ;;  %v628_v6 = vld [vmem:[%s824_s1 + $0x8] sm:$0xff]   ;;  %v632_v10 = vld [vmem:[%s824_s1 + $0x10] sm:$0xff]  }
   0x4   :  { %v625_v3 = vld [vmem:[%s824_s1 + $0x80] sm:$0xff]   ;;  %548 = vmatpush3.bf16.msra.mxu0 %v624_v2  ;;  %v629_v7 = vld [vmem:[%s824_s1 + $0x88] sm:$0xff]   ;;  %v633_v11 = vld [vmem:[%s824_s1 + $0x90] sm:$0xff]  }
   0x5   :  { %570 = vmatpush3.bf16.msra.mxu1 %v625_v3  ;;  %549 = vmatprep.subr.bf16.mxu0 %v626_v4  ;;  %v634_v12 = vld [vmem:[%s824_s1 + $0x58] sm:$0xff]   ;;  %v638_v16 = vld [vmem:[%s824_s1 + $0x60] sm:$0xff]   ;;  %v642_v20 = vld [vmem:[%s824_s1 + $0x68] sm:$0xff]  }
   0x6   :  { %571 = vmatprep.subr.bf16.mxu1 %v627_v5  ;;  %v635_v13 = vld [vmem:[%s824_s1 + $0xd8] sm:$0xff]   ;;  %v639_v17 = vld [vmem:[%s824_s1 + $0xe0] sm:$0xff]   ;;  %v643_v21 = vld [vmem:[%s824_s1 + $0xe8] sm:$0xff]  }
   0x7   :  { %v636_v14 = vld [vmem:[%s824_s1 + $0x18] sm:$0xff]   ;;  %v640_v18 = vld [vmem:[%s824_s1 + $0x20] sm:$0xff]   ;;  %v644_v22 = vld [vmem:[%s824_s1 + $0x28] sm:$0xff]  }
   0x8   :  { %550 = vmatpush3.bf16.msra.mxu0 %v628_v6  ;;  %v637_v15 = vld [vmem:[%s824_s1 + $0x98] sm:$0xff]   ;;  %v641_v19 = vld [vmem:[%s824_s1 + $0xa0] sm:$0xff]   ;;  %v645_v23 = vld [vmem:[%s824_s1 + $0xa8] sm:$0xff]  }
   0x9   :  { %572 = vmatpush3.bf16.msra.mxu1 %v629_v7  ;;  %551 = vmatprep.subr.bf16.mxu0 %v630_v8  ;;  %v646_v24 = vld [vmem:[%s824_s1 + $0x70] sm:$0xff]   ;;  %v650_v28 = vld [vmem:[%s824_s1 + $0x78] sm:$0xff]   ;;  %v20_v32 = vld [vmem:[%s825_s0] sm:$0xff] }
   0xa   :  { %573 = vmatprep.subr.bf16.mxu1 %v631_v9  ;;  %v647_v25 = vld [vmem:[%s824_s1 + $0xf0] sm:$0xff]   ;;  %v651_v29 = vld [vmem:[%s824_s1 + $0xf8] sm:$0xff]   ;;  %v501_v33 = vcombine.low %v20_v32, %v20_v32  ;;  %v502_v34 = vcombine.high %v20_v32, %v20_v32  ;;  %v21_v35 = vld [vmem:[%s825_s0 + $0x8] sm:$0xff] }
   0xb   :  { %v648_v26 = vld [vmem:[%s824_s1 + $0x30] sm:$0xff]   ;;  %v652_v30 = vld [vmem:[%s824_s1 + $0x38] sm:$0xff]   ;;  %v503_v37 = vcombine.low %v21_v35, %v21_v35  ;;  %v504_v38 = vcombine.high %v21_v35, %v21_v35  ;;  %v659_v39 = vld [vmem:[%s824_s1 + $0x100] sm:$0xff]  }
   0xc   :  { %552 = vmatpush3.bf16.msra.mxu0 %v632_v10  ;;  %v649_v27 = vld [vmem:[%s824_s1 + $0xb0] sm:$0xff]   ;;  %v653_v31 = vld [vmem:[%s824_s1 + $0xb8] sm:$0xff]   ;;  %394 = vmatprep.mubr.bf16.mxu0 %v502_v34  ;;  %v660_v40 = vld [vmem:[%s824_s1 + $0x108] sm:$0xff]  }
   0xd   :  { %574 = vmatpush3.bf16.msra.mxu1 %v633_v11  ;;  %553 = vmatprep.subr.bf16.mxu0 %v634_v12  ;;  %v661_v41 = vld [vmem:[%s824_s1 + $0x110] sm:$0xff]   ;;  %v662_v42 = vld [vmem:[%s824_s1 + $0x118] sm:$0xff]   ;;  %v663_v43 = vld [vmem:[%s824_s1 + $0x120] sm:$0xff]  }
   0xe   :  { %575 = vmatprep.subr.bf16.mxu1 %v635_v13  ;;  %434 = vmatprep.mubr.bf16.mxu1 %v504_v38  ;;  %v664_v44 = vld [vmem:[%s824_s1 + $0x128] sm:$0xff]   ;;  %v665_v45 = vld [vmem:[%s824_s1 + $0x130] sm:$0xff]   ;;  %v666_v46 = vld [vmem:[%s824_s1 + $0x138] sm:$0xff]  }
   0xf   :  { %v656_v47 = vld [vmem:[%s825_s0 + $0x10] ss:$0 sps:$4 sm:$0xff]   ;;  %v546_v60 = vld [vmem:[%s826_s2] ss:$0 sm:$0xff] }
  0x10   :  { %554 = vmatpush3.bf16.msra.mxu0 %v636_v14 }
  0x11   :  { %576 = vmatpush3.bf16.msra.mxu1 %v637_v15  ;;  %555 = vmatprep.subr.bf16.mxu0 %v638_v16 }
  0x12   :  { %577 = vmatprep.subr.bf16.mxu1 %v639_v17 }
  0x14   :  { %556 = vmatpush3.bf16.msra.mxu0 %v640_v18 }
  0x15   :  { %578 = vmatpush3.bf16.msra.mxu1 %v641_v19  ;;  %557 = vmatprep.subr.bf16.mxu0 %v642_v20 }
  0x16   :  { %579 = vmatprep.subr.bf16.mxu1 %v643_v21 }
  0x18   :  { %558 = vmatpush3.bf16.msra.mxu0 %v644_v22 }
  0x19   :  { %580 = vmatpush3.bf16.msra.mxu1 %v645_v23  ;;  %559 = vmatprep.subr.bf16.mxu0 %v646_v24 }
  0x1a   :  { %581 = vmatprep.subr.bf16.mxu1 %v647_v25 }
  0x1c   :  { %560 = vmatpush3.bf16.msra.mxu0 %v648_v26 }
  0x1d   :  { %582 = vmatpush3.bf16.msra.mxu1 %v649_v27  ;;  %561 = vmatprep.subr.bf16.mxu0 %v650_v28 }
  0x1e   :  { %583 = vmatprep.subr.bf16.mxu1 %v651_v29 }
  0x20   :  { %562 = vmatpush3.bf16.msra.mxu0 %v652_v30 }
  0x21   :  { %584 = vmatpush3.bf16.msra.mxu1 %v653_v31  ;;  %600 = vmatprep.subr.bf16.mxu0 %v667_v36 }
  0x23   :  { %395 = vmatmul.mubr.bf16.vlgmr.msra.gmra.mrb[0].mxu0 %v501_v33 }
  0x24   :  { %435 = vmatmul.mubr.bf16.vlgmr.msra.gmra.mrb[0].mxu1 %v503_v37  ;;  %601 = vmatpush3.bf16.msra.mxu0 %v659_v39 }
  0x25   :  { %602 = vmatprep.subr.bf16.mxu0 %v667_v36  ;;  %616 = vmatprep.mubr.msk.bf16.mxu0 %vm668_vm0, %v667_v36 }
  0x28   :  { %603 = vmatpush3.bf16.msra.mxu0 %v660_v40 }
  0x29   :  { %604 = vmatprep.subr.bf16.mxu0 %v667_v36 }
  0x2c   :  { %605 = vmatpush3.bf16.msra.mxu0 %v661_v41 }
  0x2d   :  { %606 = vmatprep.subr.bf16.mxu0 %v667_v36 }
  0x30   :  { %607 = vmatpush3.bf16.msra.mxu0 %v662_v42 }
  0x31   :  { %608 = vmatprep.subr.bf16.mxu0 %v667_v36 }
  0x34   :  { %609 = vmatpush3.bf16.msra.mxu0 %v663_v43 }
  0x35   :  { %610 = vmatprep.subr.bf16.mxu0 %v667_v36 }
  0x38   :  { %611 = vmatpush3.bf16.msra.mxu0 %v664_v44 }
  0x39   :  { %612 = vmatprep.subr.bf16.mxu0 %v667_v36 }
  0x3c   :  { %613 = vmatpush3.bf16.msra.mxu0 %v665_v45 }
  0x3d   :  { %614 = vmatprep.subr.bf16.mxu0 %v667_v36 }
  0x40   :  { %615 = vmatpush3.bf16.msra.mxu0 %v666_v46 }
  0x43   :  { %617 = vmatmul.mubr.bf16.vlgmr.msra.gmra.mrb[4].mxu0 %v656_v47 }
  0xf6   :  { %v563_v48 = vpop.f32.mrb[0].mxu0 }
  0xf7   :  { %v585_v49 = vpop.f32.mrb[0].mxu1  ;;  %v564_v50 = vpop.f32.mrb[1].mxu0 }
  0xf8   :  { %v565_v51 = vadd.f32 %v564_v50, %v563_v48  ;;  %v586_v52 = vpop.f32.mrb[1].mxu1  ;;  %v566_v53 = vpop.f32.mrb[2].mxu0 }
  0xf9   :  { %v587_v54 = vadd.f32 %v586_v52, %v585_v49  ;;  %v567_v55 = vpop.f32.mrb[3].mxu0  ;;  %v588_v56 = vpop.f32.mrb[2].mxu1 }
  0xfa   :  { %v589_v57 = vpop.f32.mrb[3].mxu1 }
  0xfb   :  { %v437_v58 = vadd.f32 %v587_v54, %v565_v51 }
 0x116   :  { %v476_v59 = vpop.f32.mrb[4].mxu0 }
 0x117   :  { %v477_v61 = vadd.f32 %v476_v59, %v437_v58  ;;  %v618_v62 = vpop.f32.mrb[5].mxu0 }
 0x118   :  { %v479_v63 = vpop.f32.mrb[6].mxu0 }
 0x119   :  { %v495_v0 = vadd.f32 %v546_v60, %v477_v61  ;;  %v619_v1 = vpop.f32.mrb[7].mxu0 }
 0x11b   :  { %496 = vst [vmem:[%s827_s3] sm:$0xff] %v495_v0 }

// kernel: _lambda_.11
= control target key start
LH: loop header
LB: loop body
LE: loop exit
PB: predicated region body
PF: predicated region fallthrough
CT: control target
= control target key end

     0   :  { %s315_s1 = inlined_call_operand.vmem [shape: bf16[128,128], index: 1, kind: input, shape index: {}]   ;;  %s316_s0 = inlined_call_operand.vmem [shape: bf16[24,128], index: 0, kind: input, shape index: {}]   ;;  %s317_s2 = inlined_call_operand.vmem [shape: f32[1,128], index: 2, kind: input, shape index: {}]   ;;  %s318_s3 = inlined_call_operand.vmem [shape: f32[24,128], index: 3, kind: input, shape index: {}]   ;;  %s319_s4 = inlined_call_operand.vmem [shape: f32[24,128], index: 4, kind: output, shape index: {}]  }
   0x1   :  { %v229_v0 = vld [vmem:[%s315_s1] sm:$0xff]   ;;  %v230_v1 = vld [vmem:[%s315_s1 + $0x8] sm:$0xff]   ;;  %v231_v2 = vld [vmem:[%s315_s1 + $0x10] sm:$0xff]  }
   0x2   :  { %209 = vmatprep.subr.bf16.mxu0 %v229_v0  ;;  %v232_v3 = vld [vmem:[%s315_s1 + $0x18] sm:$0xff]   ;;  %v237_v4 = vld [vmem:[%s316_s0] sm:$0xff]   ;;  %v234_v6 = vld [vmem:[%s315_s1 + $0x28] sm:$0xff]  }
   0x3   :  { %210 = vmatpush3.bf16.msra.mxu0 %v229_v0  ;;  %225 = vmatprep.mubr.bf16.mxu0 %v237_v4  ;;  %v233_v5 = vld [vmem:[%s315_s1 + $0x20] sm:$0xff]   ;;  %v235_v7 = vld [vmem:[%s315_s1 + $0x30] sm:$0xff]   ;;  %v236_v8 = vld [vmem:[%s315_s1 + $0x38] sm:$0xff]  }
   0x4   :  { %211 = vmatprep.subr.bf16.mxu0 %v230_v1  ;;  %v238_v9 = vld [vmem:[%s316_s0 + $0x8] ss:$0 sps:$4 sm:$0xff]   ;;  %v198_v10 = vld [vmem:[%s317_s2] ss:$0 sm:$0xff]  ;;  %v177_v12 = vld [vmem:[%s318_s3 + $0x10] sm:$0xff] }
   0x5   :  { %v175_v15 = vld [vmem:[%s318_s3] sm:$0xff]  ;;  %v176_v20 = vld [vmem:[%s318_s3 + $0x8] sm:$0xff] }
   0x7   :  { %212 = vmatpush3.bf16.msra.mxu0 %v230_v1 }
   0x8   :  { %213 = vmatprep.subr.bf16.mxu0 %v231_v2 }
   0xb   :  { %214 = vmatpush3.bf16.msra.mxu0 %v231_v2 }
   0xc   :  { %215 = vmatprep.subr.bf16.mxu0 %v232_v3 }
   0xf   :  { %216 = vmatpush3.bf16.msra.mxu0 %v232_v3 }
  0x10   :  { %217 = vmatprep.subr.bf16.mxu0 %v233_v5 }
  0x13   :  { %218 = vmatpush3.bf16.msra.mxu0 %v233_v5 }
  0x14   :  { %219 = vmatprep.subr.bf16.mxu0 %v234_v6 }
  0x17   :  { %220 = vmatpush3.bf16.msra.mxu0 %v234_v6 }
  0x18   :  { %221 = vmatprep.subr.bf16.mxu0 %v235_v7 }
  0x1b   :  { %222 = vmatpush3.bf16.msra.mxu0 %v235_v7 }
  0x1c   :  { %223 = vmatprep.subr.bf16.mxu0 %v236_v8 }
  0x1f   :  { %224 = vmatpush3.bf16.msra.mxu0 %v236_v8 }
  0x22   :  { %226 = vmatmul.mubr.bf16.vlgmr.msra.gmra.mrb[0].mxu0 %v238_v9 }
  0xf5   :  { %v227_v11 = vpop.f32.mrb[0].mxu0 }
  0xf6   :  { %v174_v13 = vadd.f32 %v227_v11, %v198_v10  ;;  %v139_v14 = vpop.f32.mrb[1].mxu0 }
  0xf7   :  { %v172_v16 = vadd.f32 %v198_v10, %v139_v14  ;;  %v228_v17 = vpop.f32.mrb[2].mxu0 }
  0xf8   :  { %v180_v18 = vadd.f32 %v177_v12, %v174_v13  ;;  %v142_v19 = vpop.f32.mrb[3].mxu0 }
  0xf9   :  { %v178_v21 = vadd.f32 %v175_v15, %v172_v16  ;;  %v173_v22 = vadd.f32 %v198_v10, %v142_v19 }
  0xfa   :  { %183 = vst [vmem:[%s319_s4 + $0x10] sm:$0xff] %v180_v18 }
  0xfb   :  { %181 = vst [vmem:[%s319_s4] sm:$0xff] %v178_v21  ;;  %v179_v23 = vadd.f32 %v176_v20, %v173_v22 }
  0xfd   :  { %182 = vst [vmem:[%s319_s4 + $0x8] sm:$0xff] %v179_v23 }

// kernel: _lambda_.12
= control target key start
LH: loop header
LB: loop body
LE: loop exit
PB: predicated region body
PF: predicated region fallthrough
CT: control target
= control target key end

     0   :  { %vm31_vm0 = vcmask 261120   ;;  %s327_s0 = inlined_call_operand.vmem [shape: f32[24,32], index: 0, kind: input, shape index: {}]   ;;  %s328_s1 = inlined_call_operand.vmem [shape: bf16[32,128], index: 1, kind: input, shape index: {}]   ;;  %s329_s3 = inlined_call_operand.vmem [shape: f32[1,32], index: 3, kind: input, shape index: {}]   ;;  %s330_s4 = inlined_call_operand.vmem [shape: f32[1,32], index: 4, kind: input, shape index: {}]   ;;  %s331_s2 = inlined_call_operand.vmem [shape: f32[1,128], index: 2, kind: input, shape index: {}]   ;;  %s332_s5 = inlined_call_operand.vmem [shape: f32[24,128], index: 5, kind: output, shape index: {}]  }
   0x1   :  { %v28_v0 = vld [vmem:[%s327_s0] sm:$0xff]  ;;  %v30_v1 = vld [vmem:[%s327_s0 + $0x10] sm:$0xff]  ;;  %v29_v2 = vld [vmem:[%s327_s0 + $0x8] sm:$0xff] }
   0x2   :  { %v32_v3 = vsel %vm31_vm0, %v28_v0, 0.0  ;;  %v38_v4 = vsel %vm31_vm0, %v30_v1, 0.0  ;;  %v35_v5 = vsel %vm31_vm0, %v29_v2, 0.0  ;;  %v242_v21 = vld [vmem:[%s328_s1] sm:$0xff]   ;;  %v243_v22 = vld [vmem:[%s328_s1 + $0x8] sm:$0xff]  }
   0x3   :  { %33 = vadd.xlane.f32.xlu0 %v32_v3  ;;  %39 = vadd.xlane.f32.xlu1 %v38_v4  ;;  %v223_v34 = vld [vmem:[%s329_s3] ss:$0 sm:$0xff] }
   0x4   :  { %234 = vmatprep.subr.bf16.mxu0 %v242_v21  ;;  %v224_v40 = vld [vmem:[%s330_s4] ss:$0 sm:$0xff] }
   0x5   :  { %235 = vmatpush3.bf16.msra.mxu0 %v242_v21  ;;  %v229_v48 = vld [vmem:[%s331_s2] ss:$0 sm:$0xff] }
   0x6   :  { %236 = vmatprep.subr.bf16.mxu0 %v243_v22 }
   0x7   :  { %36 = vadd.xlane.f32.xlu0 %v35_v5 }
   0x9   :  { %237 = vmatpush3.bf16.msra.mxu0 %v243_v22 }
  0x90   :  { %v34_v6 = vpop.xlane.xlu0 %33  ;;  %v40_v7 = vpop.xlane.xlu1 %39 }
  0x91   :  { %v42_v8 = vmul.f32 0.03125, %v34_v6  ;;  %v44_v9 = vmul.f32 0.03125, %v40_v7 }
  0x93   :  { %v45_v10 = vsub.f32 %v28_v0, %v42_v8  ;;  %v47_v11 = vsub.f32 %v30_v1, %v44_v9 }
  0x94   :  { %v37_v12 = vpop.xlane.xlu0 %36 }
  0x95   :  { %v43_v13 = vmul.f32 0.03125, %v37_v12  ;;  %v48_v14 = vmul.f32 %v45_v10, %v45_v10  ;;  %v50_v15 = vmul.f32 %v47_v11, %v47_v11 }
  0x97   :  { %v46_v16 = vsub.f32 %v29_v2, %v43_v13  ;;  %v51_v17 = vsel %vm31_vm0, %v48_v14, 0.0  ;;  %v57_v18 = vsel %vm31_vm0, %v50_v15, 0.0 }
  0x98   :  { %52 = vadd.xlane.f32.xlu1 %v51_v17 }
  0x99   :  { %v49_v19 = vmul.f32 %v46_v16, %v46_v16 }
  0x9b   :  { %v54_v20 = vsel %vm31_vm0, %v49_v19, 0.0 }
  0x9c   :  { %58 = vadd.xlane.f32.xlu1 %v57_v18  ;;  %55 = vadd.xlane.f32.xlu0 %v54_v20 }
 0x125   :  { %v53_v23 = vpop.xlane.xlu1 %52 }
 0x126   :  { %v60_v24 = vmul.f32 0.03125, %v53_v23 }
 0x128   :  { %v63_v25 = vadd.f32 1e-06, %v60_v24 }
 0x129   :  { %v59_v26 = vpop.xlane.xlu1 %58  ;;  %v56_v27 = vpop.xlane.xlu0 %55 }
 0x12a   :  { %244 = vrsqrt.f32 %v63_v25  ;;  %v62_v28 = vmul.f32 0.03125, %v59_v26  ;;  %v61_v29 = vmul.f32 0.03125, %v56_v27 }
 0x12c   :  { %v65_v30 = vadd.f32 1e-06, %v62_v28  ;;  %v64_v31 = vadd.f32 1e-06, %v61_v29 }
 0x12e   :  { %246 = vrsqrt.f32 %v65_v30 }
 0x12f   :  { %248 = vrsqrt.f32 %v64_v31 }
 0x134   :  { %v245_v32 = vpop.eup %244 }
 0x135   :  { %v69_v33 = vmul.f32 %v245_v32, %v45_v10 }
 0x137   :  { %v79_v39 = vmul.f32 %v223_v34, %v69_v33 }
 0x138   :  { %v247_v35 = vpop.eup %246 }
 0x139   :  { %v249_v36 = vpop.eup %248  ;;  %v71_v37 = vmul.f32 %v247_v35, %v47_v11  ;;  %v89_v44 = vadd.f32 %v224_v40, %v79_v39 }
 0x13a   :  { %v70_v38 = vmul.f32 %v249_v36, %v46_v16 }
 0x13b   :  { %v81_v41 = vmul.f32 %v223_v34, %v71_v37 }
 0x13c   :  { %v80_v42 = vmul.f32 %v223_v34, %v70_v38 }
 0x13d   :  { %v91_v43 = vadd.f32 %v224_v40, %v81_v41 }
 0x13e   :  { %v90_v45 = vadd.f32 %v224_v40, %v80_v42 }
 0x13f   :  { %v93_v46 = vpack.c.bf16 %v91_v43, %v91_v43 }
 0x140   :  { %v92_v47 = vpack.c.bf16 %v90_v45, %v89_v44 }
 0x142   :  { %238 = vmatprep.mubr.msk.bf16.mxu0 %vm31_vm0, %v92_v47 }
 0x143   :  { %239 = vmatmul.mubr.msk.bf16.vlgmr.msra.gmra.mrb[0].mxu0 %vm31_vm0, %v93_v46 }
 0x216   :  { %v240_v49 = vpop.f32.mrb[0].mxu0 }
 0x217   :  { %v188_v50 = vadd.f32 %v240_v49, %v229_v48  ;;  %v153_v51 = vpop.f32.mrb[1].mxu0 }
 0x218   :  { %v186_v52 = vadd.f32 %v229_v48, %v153_v51  ;;  %v241_v53 = vpop.f32.mrb[2].mxu0 }
 0x219   :  { %v191_v54 = vmul.f32 %v188_v50, %v188_v50  ;;  %v156_v55 = vpop.f32.mrb[3].mxu0 }
 0x21a   :  { %v189_v56 = vmul.f32 %v186_v52, %v186_v52  ;;  %v187_v57 = vadd.f32 %v229_v48, %v156_v55 }
 0x21b   :  { %v194_v58 = vmul.f32 %v191_v54, %v188_v50 }
 0x21c   :  { %v192_v59 = vmul.f32 %v189_v56, %v186_v52  ;;  %v190_v60 = vmul.f32 %v187_v57, %v187_v57 }
 0x21d   :  { %v197_v61 = vmul.f32 0.044715, %v194_v58 }
 0x21e   :  { %v195_v62 = vmul.f32 0.044715, %v192_v59  ;;  %v193_v63 = vmul.f32 %v190_v60, %v187_v57 }
 0x21f   :  { %v200_v0 = vadd.f32 %v197_v61, %v188_v50 }
 0x220   :  { %v198_v1 = vadd.f32 %v195_v62, %v186_v52  ;;  %v196_v2 = vmul.f32 0.044715, %v193_v63 }
 0x221   :  { %v203_v3 = vmul.f32 0.7978846, %v200_v0 }
 0x222   :  { %v201_v4 = vmul.f32 0.7978846, %v198_v1  ;;  %v199_v5 = vadd.f32 %v196_v2, %v187_v57 }
 0x223   :  { %250 = vtanh.f32 %v203_v3 }
 0x224   :  { %252 = vtanh.f32 %v201_v4  ;;  %v202_v6 = vmul.f32 0.7978846, %v199_v5 }
 0x226   :  { %254 = vtanh.f32 %v202_v6 }
 0x22d   :  { %v251_v7 = vpop.eup %250 }
 0x22e   :  { %v253_v8 = vpop.eup %252  ;;  %v209_v9 = vadd.f32 1.0, %v251_v7 }
 0x22f   :  { %v207_v10 = vadd.f32 1.0, %v253_v8 }
 0x230   :  { %v255_v11 = vpop.eup %254  ;;  %v212_v12 = vmul.f32 0.5, %v209_v9 }
 0x231   :  { %v210_v13 = vmul.f32 0.5, %v207_v10  ;;  %v208_v14 = vadd.f32 1.0, %v255_v11 }
 0x232   :  { %v215_v15 = vmul.f32 %v212_v12, %v188_v50 }
 0x233   :  { %v213_v16 = vmul.f32 %v210_v13, %v186_v52  ;;  %v211_v17 = vmul.f32 0.5, %v208_v14 }
 0x234   :  { %218 = vst [vmem:[%s332_s5 + $0x10] sm:$0xff] %v215_v15 }
 0x235   :  { %216 = vst [vmem:[%s332_s5] sm:$0xff] %v213_v16  ;;  %v214_v18 = vmul.f32 %v211_v17, %v187_v57 }
 0x237   :  { %217 = vst [vmem:[%s332_s5 + $0x8] sm:$0xff] %v214_v18 }

// kernel: _lambda_.14
= control target key start
LH: loop header
LB: loop body
LE: loop exit
PB: predicated region body
PF: predicated region fallthrough
CT: control target
= control target key end

     0   :  { %vm17_vm0 = vcmask 261120   ;;  %s146_s0 = inlined_call_operand.vmem [shape: f32[24,32], index: 0, kind: input, shape index: {}]   ;;  %s147_s1 = inlined_call_operand.vmem [shape: f32[1,32], index: 1, kind: input, shape index: {}]   ;;  %s148_s2 = inlined_call_operand.vmem [shape: f32[1,32], index: 2, kind: input, shape index: {}]   ;;  %s149_s3 = inlined_call_operand.vmem [shape: f32[24,32], index: 3, kind: output, shape index: {}]  }
   0x1   :  { %v14_v0 = vld [vmem:[%s146_s0] sm:$0xff]  ;;  %v16_v1 = vld [vmem:[%s146_s0 + $0x10] sm:$0xff]  ;;  %v15_v2 = vld [vmem:[%s146_s0 + $0x8] sm:$0xff] }
   0x2   :  { %v18_v3 = vsel %vm17_vm0, %v14_v0, 0.0  ;;  %v24_v4 = vsel %vm17_vm0, %v16_v1, 0.0  ;;  %v21_v5 = vsel %vm17_vm0, %v15_v2, 0.0  ;;  %v85_v31 = vld [vmem:[%s147_s1] ss:$0 sm:$0xff] }
   0x3   :  { %19 = vadd.xlane.f32.xlu0 %v18_v3  ;;  %25 = vadd.xlane.f32.xlu1 %v24_v4  ;;  %v86_v33 = vld [vmem:[%s148_s2] ss:$0 sm:$0xff] }
   0x7   :  { %22 = vadd.xlane.f32.xlu0 %v21_v5 }
  0x90   :  { %v20_v6 = vpop.xlane.xlu0 %19  ;;  %v26_v7 = vpop.xlane.xlu1 %25 }
  0x91   :  { %v28_v8 = vmul.f32 0.03125, %v20_v6  ;;  %v30_v9 = vmul.f32 0.03125, %v26_v7 }
  0x93   :  { %v31_v10 = vsub.f32 %v14_v0, %v28_v8  ;;  %v33_v11 = vsub.f32 %v16_v1, %v30_v9 }
  0x94   :  { %v23_v12 = vpop.xlane.xlu0 %22 }
  0x95   :  { %v29_v13 = vmul.f32 0.03125, %v23_v12  ;;  %v34_v14 = vmul.f32 %v31_v10, %v31_v10  ;;  %v36_v15 = vmul.f32 %v33_v11, %v33_v11 }
  0x97   :  { %v32_v16 = vsub.f32 %v15_v2, %v29_v13  ;;  %v37_v17 = vsel %vm17_vm0, %v34_v14, 0.0  ;;  %v43_v18 = vsel %vm17_vm0, %v36_v15, 0.0 }
  0x98   :  { %38 = vadd.xlane.f32.xlu1 %v37_v17 }
  0x99   :  { %v35_v19 = vmul.f32 %v32_v16, %v32_v16 }
  0x9b   :  { %v40_v20 = vsel %vm17_vm0, %v35_v19, 0.0 }
  0x9c   :  { %44 = vadd.xlane.f32.xlu1 %v43_v18  ;;  %41 = vadd.xlane.f32.xlu0 %v40_v20 }
 0x125   :  { %v39_v21 = vpop.xlane.xlu1 %38 }
 0x126   :  { %v46_v22 = vmul.f32 0.03125, %v39_v21 }
 0x128   :  { %v49_v23 = vadd.f32 1e-06, %v46_v22 }
 0x129   :  { %v45_v24 = vpop.xlane.xlu1 %44  ;;  %v42_v25 = vpop.xlane.xlu0 %41 }
 0x12a   :  { %87 = vrsqrt.f32 %v49_v23  ;;  %v48_v26 = vmul.f32 0.03125, %v45_v24  ;;  %v47_v27 = vmul.f32 0.03125, %v42_v25 }
 0x12c   :  { %v51_v28 = vadd.f32 1e-06, %v48_v26  ;;  %v50_v29 = vadd.f32 1e-06, %v47_v27 }
 0x12e   :  { %89 = vrsqrt.f32 %v51_v28 }
 0x12f   :  { %91 = vrsqrt.f32 %v50_v29 }
 0x134   :  { %v88_v30 = vpop.eup %87 }
 0x135   :  { %v55_v32 = vmul.f32 %v88_v30, %v31_v10 }
 0x137   :  { %v65_v34 = vmul.f32 %v85_v31, %v55_v32 }
 0x138   :  { %v90_v35 = vpop.eup %89 }
 0x139   :  { %v92_v36 = vpop.eup %91  ;;  %v75_v37 = vadd.f32 %v86_v33, %v65_v34  ;;  %v57_v38 = vmul.f32 %v90_v35, %v33_v11 }
 0x13a   :  { %v56_v39 = vmul.f32 %v92_v36, %v32_v16 }
 0x13b   :  { %78 = vst.msk [vmem:[%s149_s3] sm:$0xff] %vm17_vm0, %v75_v37  ;;  %v67_v40 = vmul.f32 %v85_v31, %v57_v38 }
 0x13c   :  { %v66_v41 = vmul.f32 %v85_v31, %v56_v39 }
 0x13d   :  { %v77_v42 = vadd.f32 %v86_v33, %v67_v40 }
 0x13e   :  { %v76_v43 = vadd.f32 %v86_v33, %v66_v41 }
 0x13f   :  { %80 = vst.msk [vmem:[%s149_s3 + $0x10] sm:$0xff] %vm17_vm0, %v77_v42 }
 0x140   :  { %79 = vst.msk [vmem:[%s149_s3 + $0x8] sm:$0xff] %vm17_vm0, %v76_v43 }

// kernel: _lambda_.15
= control target key start
LH: loop header
LB: loop body
LE: loop exit
PB: predicated region body
PF: predicated region fallthrough
CT: control target
= control target key end

     0   :  { %s695_s9 = smov 0   ;;  %s919_s0 = inlined_call_operand.vmem [shape: f32[196,4], index: 0, kind: input, shape index: {}]   ;;  %s920_s1 = inlined_call_operand.vmem [shape: f32[2,4,32], index: 1, kind: input, shape index: {}]   ;;  %s921_s2 = inlined_call_operand.vmem [shape: f32[2,196,32], index: 2, kind: output, shape index: {}]  }
   0x1 LB: > { %s519_s10 = sadd.s32 4294967295, %s676_s9   ;;  %p523_p0 = scmp.ge.s32.totalorder %s676_s9, 1  ;;  %s676_s9 = sphi %s695_s9, %s12_s9  }
   0x2   : > { %p111_p1 = scmp.lt.s32.totalorder %s676_s9, 3 }
   0x4   : > { %p112_p2 = pnand %p523_p0, %p111_p1 }
   0x5   : > { %p132_p3 = scmp.lt.s32.totalorder (!%p112_p2), %s519_s10, 1  ;;  %v678_v0 = vmov (!%p112_p2), 0.0   ;;  %vm679_vm0 = vmmov (!%p112_p2), 0   ;;  %vm243_vm1 = vcmask (!%p112_p2), 1043456   ;;  %v141_v1 = vld [vmem:[%s919_s0] sm:$0xff] (!%p112_p2)  ;;  %vm167_vm2 = vcmask (!%p112_p2), 31744  }
   0x6   : > { %115 = sbr.rel (%p112_p2) target bundleno = 279 (0x117), region = 28  ;;  %580 = vmatprep.subr.mxu0 (!%p112_p2), %v678_v0  ;;  %582 = vmatprep.mubr.msk.f32.mxu0 (!%p112_p2), %vm679_vm0, %v678_v0  ;;  %v154_v2 = vld [vmem:[%s919_s0 + $0x68] sm:$0xff] (!%p112_p2)  ;;  %v155_v5 = vld [vmem:[%s919_s0 + $0x70] sm:$0xff] (!%p112_p2)  ;;  %v156_v7 = vld [vmem:[%s919_s0 + $0x78] sm:$0xff] (!%p112_p2)  ;;  %vm437_vm3 = vcmask (!%p112_p2), 261120   ;;  %vm462_vm4 = vcmask (!%p112_p2), 257024  }
   0x7   : > { %657 = vmatprep.subr.mxu1 (!%p112_p2), %v678_v0  ;;  %621 = vmatprep.mubr.msk.f32.mxu1 (!%p112_p2), %vm679_vm0, %v678_v0  ;;  %v142_v4 = vld [vmem:[%s919_s0 + $0x8] sm:$0xff] (!%p112_p2)  ;;  %v143_v6 = vld [vmem:[%s919_s0 + $0x10] sm:$0xff] (!%p112_p2)  ;;  %v144_v8 = vld [vmem:[%s919_s0 + $0x18] sm:$0xff] (!%p112_p2) }
   0x8   : > { %v157_v9 = vld [vmem:[%s919_s0 + $0x80] sm:$0xff] (!%p112_p2)  ;;  %v158_v11 = vld [vmem:[%s919_s0 + $0x88] sm:$0xff] (!%p112_p2)  ;;  %v159_v13 = vld [vmem:[%s919_s0 + $0x90] sm:$0xff] (!%p112_p2) }
   0x9   : > { %v145_v10 = vld [vmem:[%s919_s0 + $0x20] sm:$0xff] (!%p112_p2)  ;;  %v146_v12 = vld [vmem:[%s919_s0 + $0x28] sm:$0xff] (!%p112_p2)  ;;  %v147_v14 = vld [vmem:[%s919_s0 + $0x30] sm:$0xff] (!%p112_p2) }
   0xa   : > { %v160_v15 = vld [vmem:[%s919_s0 + $0x98] sm:$0xff] (!%p112_p2)  ;;  %v161_v17 = vld [vmem:[%s919_s0 + $0xa0] sm:$0xff] (!%p112_p2)  ;;  %v162_v19 = vld [vmem:[%s919_s0 + $0xa8] sm:$0xff] (!%p112_p2) }
   0xb   : > { %v148_v16 = vld [vmem:[%s919_s0 + $0x38] sm:$0xff] (!%p112_p2)  ;;  %v149_v18 = vld [vmem:[%s919_s0 + $0x40] sm:$0xff] (!%p112_p2)  ;;  %v150_v20 = vld [vmem:[%s919_s0 + $0x48] sm:$0xff] (!%p112_p2) }
   0xc   : > { %v163_v21 = vld [vmem:[%s919_s0 + $0xb0] sm:$0xff] (!%p112_p2)  ;;  %v164_v23 = vld [vmem:[%s919_s0 + $0xb8] sm:$0xff] (!%p112_p2)  ;;  %v165_v25 = vld [vmem:[%s919_s0 + $0xc0] sm:$0xf] (!%p112_p2) }
   0xd   : > { %s923_s10 = smov (!%p132_p3, %s519_s10), 1  ;;  %v151_v22 = vld [vmem:[%s919_s0 + $0x50] sm:$0xff]  ;;  %v152_v24 = vld [vmem:[%s919_s0 + $0x58] sm:$0xff]  ;;  %v153_v26 = vld [vmem:[%s919_s0 + $0x60] sm:$0xff] }
   0xe   : > { %s524_s11 = sshll.u32 %s923_s10, 2  ;;  %s659_s13 = smul.u32 200, %s923_s10 }
   0xf   : > { %s135_s14 = scalar_lea.vmem %s920_s1, %s524_s11 }
  0x10   : > { %v166_v3 = vld [vmem:[%s135_s14] sm:$0xf]  ;;  %s865_s16 = scalar_lea.vmem %s921_s2, %s659_s13 }
  0x11   : > { %581 = vmatpush3.msk.msra.mxu0 %vm243_vm1, %v166_v3  ;;  %658 = vmatpush3.msk.msra.mxu1 %vm243_vm1, %v166_v3 }
  0x12   : > { %583 = vmatmul.mubr.msk.f32.vlgmr.msra.gmra.mrb[0].mxu0 %vm167_vm2, %v141_v1  ;;  %622 = vmatmul.mubr.msk.f32.vlgmr.msra.gmra.mrb[0].mxu1 %vm167_vm2, %v154_v2 }
  0x13   : > { %585 = vmatprep.mubr.msk.f32.mxu0 %vm679_vm0, %v678_v0  ;;  %624 = vmatprep.mubr.msk.f32.mxu1 %vm679_vm0, %v678_v0 }
  0x16   : > { %586 = vmatmul.mubr.msk.f32.gmra.mrb[2].mxu0 %vm167_vm2, %v142_v4  ;;  %625 = vmatmul.mubr.msk.f32.gmra.mrb[2].mxu1 %vm167_vm2, %v155_v5 }
  0x17   : > { %588 = vmatprep.mubr.msk.f32.mxu0 %vm679_vm0, %v678_v0  ;;  %627 = vmatprep.mubr.msk.f32.mxu1 %vm679_vm0, %v678_v0 }
  0x1a   : > { %589 = vmatmul.mubr.msk.f32.gmra.mrb[4].mxu0 %vm167_vm2, %v143_v6  ;;  %628 = vmatmul.mubr.msk.f32.gmra.mrb[4].mxu1 %vm167_vm2, %v156_v7 }
  0x1b   : > { %591 = vmatprep.mubr.msk.f32.mxu0 %vm679_vm0, %v678_v0  ;;  %630 = vmatprep.mubr.msk.f32.mxu1 %vm679_vm0, %v678_v0 }
  0x1e   : > { %592 = vmatmul.mubr.msk.f32.gmra.mrb[6].mxu0 %vm167_vm2, %v144_v8  ;;  %631 = vmatmul.mubr.msk.f32.gmra.mrb[6].mxu1 %vm167_vm2, %v157_v9 }
  0x1f   : > { %594 = vmatprep.mubr.msk.f32.mxu0 %vm679_vm0, %v678_v0  ;;  %633 = vmatprep.mubr.msk.f32.mxu1 %vm679_vm0, %v678_v0 }
  0x22   : > { %595 = vmatmul.mubr.msk.f32.gmra.mrb[8].mxu0 %vm167_vm2, %v145_v10  ;;  %634 = vmatmul.mubr.msk.f32.gmra.mrb[8].mxu1 %vm167_vm2, %v158_v11 }
  0x23   : > { %597 = vmatprep.mubr.msk.f32.mxu0 %vm679_vm0, %v678_v0  ;;  %636 = vmatprep.mubr.msk.f32.mxu1 %vm679_vm0, %v678_v0 }
  0x26   : > { %598 = vmatmul.mubr.msk.f32.gmra.mrb[10].mxu0 %vm167_vm2, %v146_v12  ;;  %637 = vmatmul.mubr.msk.f32.gmra.mrb[10].mxu1 %vm167_vm2, %v159_v13 }
  0x27   : > { %600 = vmatprep.mubr.msk.f32.mxu0 %vm679_vm0, %v678_v0  ;;  %639 = vmatprep.mubr.msk.f32.mxu1 %vm679_vm0, %v678_v0 }
  0x2a   : > { %601 = vmatmul.mubr.msk.f32.gmra.mrb[12].mxu0 %vm167_vm2, %v147_v14  ;;  %640 = vmatmul.mubr.msk.f32.gmra.mrb[12].mxu1 %vm167_vm2, %v160_v15 }
  0x2b   : > { %603 = vmatprep.mubr.msk.f32.mxu0 %vm679_vm0, %v678_v0  ;;  %642 = vmatprep.mubr.msk.f32.mxu1 %vm679_vm0, %v678_v0 }
  0x2e   : > { %604 = vmatmul.mubr.msk.f32.gmra.mrb[14].mxu0 %vm167_vm2, %v148_v16  ;;  %643 = vmatmul.mubr.msk.f32.gmra.mrb[14].mxu1 %vm167_vm2, %v161_v17 }
  0x2f   : > { %606 = vmatprep.mubr.msk.f32.mxu0 %vm679_vm0, %v678_v0  ;;  %645 = vmatprep.mubr.msk.f32.mxu1 %vm679_vm0, %v678_v0 }
  0x32   : > { %607 = vmatmul.mubr.msk.f32.gmra.mrb[16].mxu0 %vm167_vm2, %v149_v18  ;;  %646 = vmatmul.mubr.msk.f32.gmra.mrb[16].mxu1 %vm167_vm2, %v162_v19 }
  0x33   : > { %609 = vmatprep.mubr.msk.f32.mxu0 %vm679_vm0, %v678_v0  ;;  %648 = vmatprep.mubr.msk.f32.mxu1 %vm679_vm0, %v678_v0 }
  0x36   : > { %610 = vmatmul.mubr.msk.f32.gmra.mrb[18].mxu0 %vm167_vm2, %v150_v20  ;;  %649 = vmatmul.mubr.msk.f32.gmra.mrb[18].mxu1 %vm167_vm2, %v163_v21 }
  0x37   : > { %612 = vmatprep.mubr.msk.f32.mxu0 %vm679_vm0, %v678_v0  ;;  %651 = vmatprep.mubr.msk.f32.mxu1 %vm679_vm0, %v678_v0 }
  0x3a   : > { %613 = vmatmul.mubr.msk.f32.gmra.mrb[20].mxu0 %vm167_vm2, %v151_v22  ;;  %652 = vmatmul.mubr.msk.f32.gmra.mrb[20].mxu1 %vm167_vm2, %v164_v23 }
  0x3b   : > { %615 = vmatprep.mubr.msk.f32.mxu0 %vm679_vm0, %v678_v0  ;;  %654 = vmatprep.mubr.msk.f32.mxu1 %vm679_vm0, %v678_v0 }
  0x3e   : > { %616 = vmatmul.mubr.msk.f32.gmra.mrb[22].mxu0 %vm167_vm2, %v152_v24  ;;  %655 = vmatmul.mubr.msk.f32.gmra.mrb[22].mxu1 %vm167_vm2, %v165_v25 }
  0x3f   : > { %618 = vmatprep.mubr.msk.f32.mxu0 %vm679_vm0, %v678_v0 }
  0x42   : > { %619 = vmatmul.mubr.msk.f32.gmra.mrb[24].mxu0 %vm167_vm2, %v153_v26 }
  0xe5   : > { %v313_v27 = vpop.f32.mrb[0].mxu0  ;;  %v378_v28 = vpop.f32.mrb[0].mxu1 }
  0xe6   : > { %438 = vst.msk [vmem:[%s865_s16] sm:$0xff] %vm437_vm3, %v313_v27  ;;  %v584_v29 = vpop.f32.mrb[1].mxu0  ;;  %451 = vst.msk [vmem:[%s865_s16 + $0x68] sm:$0xff] %vm437_vm3, %v378_v28  ;;  %v623_v30 = vpop.f32.mrb[1].mxu1 }
  0xe9   : > { %v318_v31 = vpop.f32.mrb[2].mxu0  ;;  %v383_v32 = vpop.f32.mrb[2].mxu1 }
  0xea   : > { %439 = vst.msk [vmem:[%s865_s16 + $0x8] sm:$0xff] %vm437_vm3, %v318_v31  ;;  %v587_v33 = vpop.f32.mrb[3].mxu0  ;;  %452 = vst.msk [vmem:[%s865_s16 + $0x70] sm:$0xff] %vm437_vm3, %v383_v32  ;;  %v626_v34 = vpop.f32.mrb[3].mxu1 }
  0xed   : > { %v323_v35 = vpop.f32.mrb[4].mxu0  ;;  %v388_v36 = vpop.f32.mrb[4].mxu1 }
  0xee   : > { %440 = vst.msk [vmem:[%s865_s16 + $0x10] sm:$0xff] %vm437_vm3, %v323_v35  ;;  %v590_v37 = vpop.f32.mrb[5].mxu0  ;;  %453 = vst.msk [vmem:[%s865_s16 + $0x78] sm:$0xff] %vm437_vm3, %v388_v36  ;;  %v629_v38 = vpop.f32.mrb[5].mxu1 }
  0xf1   : > { %v328_v39 = vpop.f32.mrb[6].mxu0  ;;  %v393_v40 = vpop.f32.mrb[6].mxu1 }
  0xf2   : > { %441 = vst.msk [vmem:[%s865_s16 + $0x18] sm:$0xff] %vm437_vm3, %v328_v39  ;;  %v593_v41 = vpop.f32.mrb[7].mxu0  ;;  %454 = vst.msk [vmem:[%s865_s16 + $0x80] sm:$0xff] %vm437_vm3, %v393_v40  ;;  %v632_v42 = vpop.f32.mrb[7].mxu1 }
  0xf5   : > { %v333_v43 = vpop.f32.mrb[8].mxu0  ;;  %v398_v44 = vpop.f32.mrb[8].mxu1 }
  0xf6   : > { %442 = vst.msk [vmem:[%s865_s16 + $0x20] sm:$0xff] %vm437_vm3, %v333_v43  ;;  %v596_v45 = vpop.f32.mrb[9].mxu0  ;;  %455 = vst.msk [vmem:[%s865_s16 + $0x88] sm:$0xff] %vm437_vm3, %v398_v44  ;;  %v635_v46 = vpop.f32.mrb[9].mxu1 }
  0xf9   : > { %v338_v47 = vpop.f32.mrb[10].mxu0  ;;  %v403_v48 = vpop.f32.mrb[10].mxu1 }
  0xfa   : > { %443 = vst.msk [vmem:[%s865_s16 + $0x28] sm:$0xff] %vm437_vm3, %v338_v47  ;;  %v599_v49 = vpop.f32.mrb[11].mxu0  ;;  %456 = vst.msk [vmem:[%s865_s16 + $0x90] sm:$0xff] %vm437_vm3, %v403_v48  ;;  %v638_v50 = vpop.f32.mrb[11].mxu1 }
  0xfd   : > { %v343_v51 = vpop.f32.mrb[12].mxu0  ;;  %v408_v52 = vpop.f32.mrb[12].mxu1 }
  0xfe   : > { %444 = vst.msk [vmem:[%s865_s16 + $0x30] sm:$0xff] %vm437_vm3, %v343_v51  ;;  %v602_v53 = vpop.f32.mrb[13].mxu0  ;;  %457 = vst.msk [vmem:[%s865_s16 + $0x98] sm:$0xff] %vm437_vm3, %v408_v52  ;;  %v641_v54 = vpop.f32.mrb[13].mxu1 }
 0x101   : > { %v348_v55 = vpop.f32.mrb[14].mxu0  ;;  %v413_v56 = vpop.f32.mrb[14].mxu1 }
 0x102   : > { %445 = vst.msk [vmem:[%s865_s16 + $0x38] sm:$0xff] %vm437_vm3, %v348_v55  ;;  %v605_v57 = vpop.f32.mrb[15].mxu0  ;;  %458 = vst.msk [vmem:[%s865_s16 + $0xa0] sm:$0xff] %vm437_vm3, %v413_v56  ;;  %v644_v58 = vpop.f32.mrb[15].mxu1 }
 0x105   : > { %v353_v59 = vpop.f32.mrb[16].mxu0  ;;  %v418_v60 = vpop.f32.mrb[16].mxu1 }
 0x106   : > { %446 = vst.msk [vmem:[%s865_s16 + $0x40] sm:$0xff] %vm437_vm3, %v353_v59  ;;  %v608_v61 = vpop.f32.mrb[17].mxu0  ;;  %459 = vst.msk [vmem:[%s865_s16 + $0xa8] sm:$0xff] %vm437_vm3, %v418_v60  ;;  %v647_v62 = vpop.f32.mrb[17].mxu1 }
 0x109   : > { %v358_v63 = vpop.f32.mrb[18].mxu0  ;;  %v423_v0 = vpop.f32.mrb[18].mxu1 }
 0x10a   : > { %447 = vst.msk [vmem:[%s865_s16 + $0x48] sm:$0xff] %vm437_vm3, %v358_v63  ;;  %v611_v1 = vpop.f32.mrb[19].mxu0  ;;  %460 = vst.msk [vmem:[%s865_s16 + $0xb0] sm:$0xff] %vm437_vm3, %v423_v0  ;;  %v650_v2 = vpop.f32.mrb[19].mxu1 }
 0x10d   : > { %v363_v3 = vpop.f32.mrb[20].mxu0  ;;  %v428_v4 = vpop.f32.mrb[20].mxu1 }
 0x10e   : > { %448 = vst.msk [vmem:[%s865_s16 + $0x50] sm:$0xff] %vm437_vm3, %v363_v3  ;;  %v614_v5 = vpop.f32.mrb[21].mxu0  ;;  %461 = vst.msk [vmem:[%s865_s16 + $0xb8] sm:$0xff] %vm437_vm3, %v428_v4  ;;  %v653_v6 = vpop.f32.mrb[21].mxu1 }
 0x111   : > { %v368_v7 = vpop.f32.mrb[22].mxu0  ;;  %v433_v8 = vpop.f32.mrb[22].mxu1 }
 0x112   : > { %449 = vst.msk [vmem:[%s865_s16 + $0x58] sm:$0xff] %vm437_vm3, %v368_v7  ;;  %v617_v9 = vpop.f32.mrb[23].mxu0  ;;  %v656_v10 = vpop.f32.mrb[23].mxu1 }
 0x113   : > { %463 = vst.msk [vmem:[%s865_s16 + $0xc0] sm:$0xf] %vm462_vm4, %v433_v8 }
 0x115   : > { %v373_v11 = vpop.f32.mrb[24].mxu0 }
 0x116   : > { %450 = vst.msk [vmem:[%s865_s16 + $0x60] sm:$0xff] %vm437_vm3, %v373_v11  ;;  %v620_v12 = vpop.f32.mrb[25].mxu0 }
 0x117 PF: > { %s12_s9 = sadd.s32 1, %s676_s9  }
 0x118   : > { %p9_p4 = scmp.ge.s32.totalorder %s12_s9, 4  }
 0x11a   :  { %11 = sbr.rel (!%p9_p4) target bundleno = 1 (0x1), region = 58 }

</bundles_post_ra>
